<compile_context>
chip_gen: v7x
topology: tpu7x:2x2x1
jax: 0.10.0
libtpu: 0.0.40
codegen_flags: <defaults>
</compile_context>

<pallas_src>
import functools

import jax
import jax.numpy as jnp
from jax.experimental import pallas as pl
from jax.experimental.pallas import tpu as pltpu


# ---------------------------------------------------------------------------
# Fused kernel: conv(im2col matmul)+bias+ReLU -> fc1 (K-tiled, accumulated) -> ReLU -> fc2
# Grid: (nk,) over conv-channel tiles (== K tiles of fc1), reduction ("arbitrary") axis.
# ---------------------------------------------------------------------------
def _fused_cnn_kernel(patches_ref, wc_ref, bc_ref, w1_ref, b1_ref, w2_ref, b2_ref,
                      o_ref, feat_sc, acc_sc, *, batch, hw, ct, nk):
    # patches_ref: (9, B*HW)    im2col patches, resident across all grid steps
    # wc_ref:      (C, 9)       conv weight, fully resident (sliced per tile with pl.ds)
    # bc_ref:      (C, 1)       conv bias, fully resident
    # w1_ref:      (Ct, HW, Hd) fc1 weight tile (PyTorch flatten order c*HW + p), bf16
    # b1_ref:      (1, Hd)      fc1 bias
    # w2_ref:      (Hd, Ncls)   fc2 weight
    # b2_ref:      (1, Ncls)    fc2 bias
    # o_ref:       (B, Ncls)    logits (written on the last K tile only)
    # feat_sc:     VMEM (Ct, B, HW) bf16  conv activations of this channel tile
    # acc_sc:      VMEM (B, Hd)     f32   fc1 accumulator (persists across grid steps)
    if nk > 1:
        k = pl.program_id(0)
        off = pl.multiple_of(k * ct, 8)

        @pl.when(k == 0)
        def _init():
            acc_sc[...] = jnp.zeros_like(acc_sc)
    else:
        off = 0                                                   # single step: no branches

    # conv3x3 for this channel tile, all batch elements in one lane-dense matmul.
    wc = wc_ref[pl.ds(off, ct), :]                                # (Ct, 9)
    bc = bc_ref[pl.ds(off, ct), :]                                # (Ct, 1)
    z = jnp.dot(wc, patches_ref[...],
                preferred_element_type=jnp.float32)               # (Ct, B*HW)
    z = jnp.maximum(z + bc, 0.0)                                  # bias + ReLU in f32
    for b in range(batch):                                        # static, 128-aligned lane slices
        feat_sc[:, b, :] = z[:, b * hw:(b + 1) * hw].astype(feat_sc.dtype)

    # fc1 partial for this K tile: sum_{c in tile} feat[c] (B,HW) @ w1[c] (HW,Hd)
    part = jnp.einsum("cbp,cph->cbh", feat_sc[...], w1_ref[...],
                      preferred_element_type=jnp.float32)         # (Ct, B, Hd) f32
    partial = jnp.sum(part, axis=0)                               # (B, Hd)

    def _finalize(h_pre):
        h = jnp.maximum(h_pre + b1_ref[...], 0.0)                 # (B, Hd)
        o_ref[...] = (jnp.dot(h, w2_ref[...], preferred_element_type=jnp.float32)
                      + b2_ref[...]).astype(o_ref.dtype)

    if nk > 1:
        acc_sc[...] += partial

        @pl.when(k == nk - 1)
        def _done():
            _finalize(acc_sc[...])
    else:
        _finalize(partial)                                        # straight-line epilogue


# ---------------------------------------------------------------------------
# One-time parameter repack (would be done offline in a real deployment)
# ---------------------------------------------------------------------------
def pack_params(params):
    conv_w, conv_b, w1, b1, w2, b2 = params
    C = conv_w.shape[0]
    kHW = conv_w.shape[2] * conv_w.shape[3]
    HW = w1.shape[0] // C
    Hd = w1.shape[1]
    wc = conv_w.reshape(C, kHW).astype(jnp.float32)               # (48, 9)
    bc = conv_b.reshape(C, 1).astype(jnp.float32)                 # (48, 1)
    # w1[f, h] with f = c*HW + p (PyTorch NCHW flatten)  ->  (C, HW, Hd), bf16
    w1r = w1.reshape(C, HW, Hd).astype(jnp.bfloat16)
    return (wc, bc, w1r,
            b1.reshape(1, -1).astype(jnp.float32),
            w2.astype(jnp.float32),
            b2.reshape(1, -1).astype(jnp.float32))


def _pick_channel_tile(C):
    """nk=1 on v7x, 2 on v6e/default, 3 on v5e (per HBM bandwidth / grid-step overhead)."""
    kind = ""
    try:
        kind = jax.devices()[0].device_kind.lower()
    except Exception:
        pass
    if "v7" in kind or "tpu7" in kind:
        nk = 1
    elif "v5" in kind:
        nk = 3
    else:
        nk = 2
    ct = C // nk
    if C % nk != 0 or ct % 8 != 0:                                # keep (8,128)-aligned tiles
        ct = C
    return ct


# ---------------------------------------------------------------------------
# Forward pass
# ---------------------------------------------------------------------------
def simple_cnn_forward(x, packed, *, channel_tile=None):
    wc, bc, w1r, b1, w2, b2 = packed
    B, _, H, W = x.shape
    C, HW, Hd = w1r.shape
    Ncls = w2.shape[1]
    kH = kW = 3
    pad = 1
    assert HW == H * W
    if channel_tile is None:
        channel_tile = _pick_channel_tile(C)
    Ct = channel_tile
    assert C % Ct == 0 and Ct % 8 == 0, (C, Ct)                   # (8,128) rule for Ct tiles
    nk = C // Ct

    # im2col in plain JAX (tiny): patches[kh*3+kw, b*HW + h*W+w] = x_pad[b, 0, h+kh, w+kw]
    xp = jnp.pad(x, ((0, 0), (0, 0), (pad, pad), (pad, pad)))
    patches = jnp.stack(
        [xp[:, 0, kh:kh + H, kw:kw + W] for kh in range(kH) for kw in range(kW)],
        axis=0).reshape(kH * kW, B * HW)                          # (9, B*HW) f32

    w1_spec = pl.BlockSpec((Ct, HW, Hd), lambda k: (k, 0, 0))     # streamed fc1 weight tile
    if nk >= 3 and hasattr(pl, "Buffered"):
        try:   # v5e: 3-deep buffering keeps the weight DMA ahead of the short per-tile compute
            w1_spec = pl.BlockSpec((Ct, HW, Hd), lambda k: (k, 0, 0),
                                   pipeline_mode=pl.Buffered(3))
        except TypeError:
            pass

    kernel = functools.partial(_fused_cnn_kernel, batch=B, hw=HW, ct=Ct, nk=nk)
    return pl.pallas_call(
        kernel,
        out_shape=jax.ShapeDtypeStruct((B, Ncls), jnp.float32),
        grid=(nk,),
        in_specs=[
            pl.BlockSpec((kH * kW, B * HW), lambda k: (0, 0)),    # patches (resident)
            pl.BlockSpec((C, kH * kW), lambda k: (0, 0)),         # conv weight (resident)
            pl.BlockSpec((C, 1), lambda k: (0, 0)),               # conv bias (resident)
            w1_spec,                                              # fc1 weight tile (bf16)
            pl.BlockSpec((1, Hd), lambda k: (0, 0)),              # fc1 bias
            pl.BlockSpec((Hd, Ncls), lambda k: (0, 0)),           # fc2 weight
            pl.BlockSpec((1, Ncls), lambda k: (0, 0)),            # fc2 bias
        ],
        out_specs=pl.BlockSpec((B, Ncls), lambda k: (0, 0)),
        scratch_shapes=[
            pltpu.VMEM((Ct, B, HW), jnp.bfloat16),                # conv activations (tile)
            pltpu.VMEM((B, Hd), jnp.float32),                     # fc1 accumulator
        ],
        compiler_params=pltpu.CompilerParams(
            dimension_semantics=("arbitrary",)),                  # K (reduction) axis
    )(patches, wc, bc, w1r, b1, w2, b2)


# ---------------------------------------------------------------------------
# Pure-JAX reference (semantics check against the PyTorch module)
# ---------------------------------------------------------------------------
def reference_forward(x, params):
    conv_w, conv_b, w1, b1, w2, b2 = params
    y = jax.lax.conv_general_dilated(
        x, conv_w, window_strides=(1, 1), padding=((1, 1), (1, 1)),
        dimension_numbers=("NCHW", "OIHW", "NCHW"))
    y = jnp.maximum(y + conv_b.reshape(1, -1, 1, 1), 0.0)
    y = y.reshape(x.shape[0], -1)
    h = jnp.maximum(y @ w1 + b1, 0.0)
    return h @ w2 + b2


if __name__ == "__main__":
    # SimpleCNNBaseline(input_size=16, num_classes=2, hidden_size=32, kernel_size=3, padding=1)
    input_size = 16
    num_classes = 2
    hidden_size = 32
    kernel_size = 3
    padding = 1
    conv_ch = 48
    batch = 2

    spatial_out = input_size + 2 * padding - kernel_size + 1      # == input_size
    fc1_in = conv_ch * spatial_out ** 2                           # 48 * 16 * 16 = 12288

    key = jax.random.PRNGKey(0)
    kx, k1, k2, k3, k4, k5, k6 = jax.random.split(key, 7)

    x = jax.random.normal(kx, (batch, 1, input_size, input_size), dtype=jnp.float32)

    # Deterministic synthetic parameters (shapes match nn.Conv2d / nn.Linear of the module;
    # Linear weights kept transposed to (in, out) so the reference is x @ W).
    conv_w = jax.random.normal(k1, (conv_ch, 1, kernel_size, kernel_size), jnp.float32) * 0.1
    conv_b = jax.random.normal(k2, (conv_ch,), jnp.float32) * 0.1
    w1 = jax.random.normal(k3, (fc1_in, hidden_size), jnp.float32) * 0.02
    b1 = jax.random.normal(k4, (hidden_size,), jnp.float32) * 0.1
    w2 = jax.random.normal(k5, (hidden_size, num_classes), jnp.float32) * 0.1
    b2 = jax.random.normal(k6, (num_classes,), jnp.float32) * 0.1

    params = (conv_w, conv_b, w1, b1, w2, b2)
    packed = pack_params(params)

    out = simple_cnn_forward(x, packed)
    out = jax.block_until_ready(out)

    ref = reference_forward(x, params)
    assert out.shape == (batch, num_classes), out.shape
    # bf16 fc1 weights/activations: tolerance loosened vs a pure-f32 baseline.
    if not jnp.allclose(out, ref, rtol=5e-2, atol=5e-2):
        raise AssertionError(f"mismatch: pallas={out} ref={ref}")

    print("KERNEL_OK")
</pallas_src>

<mosaic_0001>
module attributes {stable_mosaic.version = 11 : i64} {
  func.func @_fused_cnn_kernel(%arg0: i32, %arg1: memref<9x512xf32, #tpu.memory_space<vmem>>, %arg2: memref<48x9xf32, #tpu.memory_space<vmem>>, %arg3: memref<48x1xf32, #tpu.memory_space<vmem>>, %arg4: memref<24x256x32xbf16, #tpu.memory_space<vmem>>, %arg5: memref<1x32xf32, #tpu.memory_space<vmem>>, %arg6: memref<32x2xf32, #tpu.memory_space<vmem>>, %arg7: memref<1x2xf32, #tpu.memory_space<vmem>>, %arg8: memref<2x2xf32, #tpu.memory_space<vmem>>, %arg9: memref<24x2x256xbf16, #tpu.memory_space<vmem>>, %arg10: memref<2x32xf32, #tpu.memory_space<vmem>>) attributes {dimension_semantics = [#tpu.dimension_semantics<arbitrary>], iteration_bounds = array<i64: 2>, scalar_prefetch = 0 : i64, scratch_operands = 2 : i64, tpu.core_type = #tpu.core_type<tc>, window_params = [{pipeline_mode = #tpu.pipeline_mode<synchronous>, transform_indices = @transform_0, window_bounds = array<i64: 9, 512>}, {pipeline_mode = #tpu.pipeline_mode<synchronous>, transform_indices = @transform_1, window_bounds = array<i64: 48, 9>}, {pipeline_mode = #tpu.pipeline_mode<synchronous>, transform_indices = @transform_2, window_bounds = array<i64: 48, 1>}, {transform_indices = @transform_3, window_bounds = array<i64: 24, 256, 32>}, {pipeline_mode = #tpu.pipeline_mode<synchronous>, transform_indices = @transform_4, window_bounds = array<i64: 1, 32>}, {pipeline_mode = #tpu.pipeline_mode<synchronous>, transform_indices = @transform_5, window_bounds = array<i64: 32, 2>}, {pipeline_mode = #tpu.pipeline_mode<synchronous>, transform_indices = @transform_6, window_bounds = array<i64: 1, 2>}, {pipeline_mode = #tpu.pipeline_mode<synchronous>, transform_indices = @transform_7, window_bounds = array<i64: 2, 2>}]} {
    %c24_i32 = arith.constant 24 : i32
    %0 = arith.muli %arg0, %c24_i32 : i32
    %1 = tpu.assume_multiple %0, 8 : i32
    %c0_i32 = arith.constant 0 : i32
    %2 = arith.cmpi eq, %arg0, %c0_i32 : i32
    %3 = arith.extui %2 : i1 to i32
    %c0_i32_0 = arith.constant 0 : i32
    %4 = arith.cmpi ne, %3, %c0_i32_0 : i32
    scf.if %4 {
      %cst_23 = arith.constant 0.000000e+00 : f32
      %35 = vector.broadcast %cst_23 : f32 to vector<2x32xf32>
      %c0_24 = arith.constant 0 : index
      %c0_25 = arith.constant 0 : index
      %36 = vector.load %arg10[%c0_24, %c0_25] : memref<2x32xf32, #tpu.memory_space<vmem>>, vector<2x32xf32>
      tpu.vector_store %arg10[%c0_24, %c0_25], %35 {strides = array<i32>} : memref<2x32xf32, #tpu.memory_space<vmem>>, vector<2x32xf32>,
    } else {
    }
    %5 = arith.index_cast %1 : i32 to index
    %c0 = arith.constant 0 : index
    %6 = vector.load %arg2[%5, %c0] : memref<48x9xf32, #tpu.memory_space<vmem>>, vector<24x9xf32>
    %7 = arith.index_cast %1 : i32 to index
    %c0_1 = arith.constant 0 : index
    %8 = vector.load %arg3[%7, %c0_1] : memref<48x1xf32, #tpu.memory_space<vmem>>, vector<24x1xf32>
    %c0_2 = arith.constant 0 : index
    %c0_3 = arith.constant 0 : index
    %9 = vector.load %arg1[%c0_2, %c0_3] : memref<9x512xf32, #tpu.memory_space<vmem>>, vector<9x512xf32>
    %cst = arith.constant dense<0.000000e+00> : vector<24x512xf32>
    %10 = tpu.matmul %6, %9, %cst {dimension_numbers = #tpu.dot_dimension_numbers<[1], [0], [0], [1], [0, 0, 1, 1], [], []>} : vector<24x9xf32>, vector<9x512xf32>, vector<24x512xf32> -> vector<24x512xf32>
    %11 = vector.broadcast %8 : vector<24x1xf32> to vector<24x512xf32>
    %12 = arith.addf %10, %11 : vector<24x512xf32>
    %cst_4 = arith.constant 0.000000e+00 : f32
    %13 = vector.broadcast %cst_4 : f32 to vector<24x512xf32>
    %14 = arith.maximumf %12, %13 : vector<24x512xf32>
    %15 = vector.extract_strided_slice %14 {offsets = [0, 0], sizes = [24, 256], strides = [1, 1]} : vector<24x512xf32> to vector<24x256xf32>
    %16 = arith.truncf %15 : vector<24x256xf32> to vector<24x256xbf16>
    %c0_5 = arith.constant 0 : index
    %c0_6 = arith.constant 0 : index
    %c0_7 = arith.constant 0 : index
    %17 = vector.load %arg9[%c0_5, %c0_6, %c0_7] : memref<24x2x256xbf16, #tpu.memory_space<vmem>>, vector<24x1x256xbf16>
    %18 = vector.shape_cast %17 : vector<24x1x256xbf16> to vector<24x256xbf16>
    %19 = vector.shape_cast %16 : vector<24x256xbf16> to vector<24x1x256xbf16>
    tpu.vector_store %arg9[%c0_5, %c0_6, %c0_7], %19 {strides = array<i32>} : memref<24x2x256xbf16, #tpu.memory_space<vmem>>, vector<24x1x256xbf16>,
    %20 = vector.extract_strided_slice %14 {offsets = [0, 256], sizes = [24, 256], strides = [1, 1]} : vector<24x512xf32> to vector<24x256xf32>
    %21 = arith.truncf %20 : vector<24x256xf32> to vector<24x256xbf16>
    %c0_8 = arith.constant 0 : index
    %c1 = arith.constant 1 : index
    %c0_9 = arith.constant 0 : index
    %22 = vector.load %arg9[%c0_8, %c1, %c0_9] : memref<24x2x256xbf16, #tpu.memory_space<vmem>>, vector<24x1x256xbf16>
    %23 = vector.shape_cast %22 : vector<24x1x256xbf16> to vector<24x256xbf16>
    %24 = vector.shape_cast %21 : vector<24x256xbf16> to vector<24x1x256xbf16>
    tpu.vector_store %arg9[%c0_8, %c1, %c0_9], %24 {strides = array<i32>} : memref<24x2x256xbf16, #tpu.memory_space<vmem>>, vector<24x1x256xbf16>,
    %c0_10 = arith.constant 0 : index
    %c0_11 = arith.constant 0 : index
    %c0_12 = arith.constant 0 : index
    %25 = vector.load %arg9[%c0_10, %c0_11, %c0_12] : memref<24x2x256xbf16, #tpu.memory_space<vmem>>, vector<24x2x256xbf16>
    %c0_13 = arith.constant 0 : index
    %c0_14 = arith.constant 0 : index
    %c0_15 = arith.constant 0 : index
    %26 = vector.load %arg4[%c0_13, %c0_14, %c0_15] : memref<24x256x32xbf16, #tpu.memory_space<vmem>>, vector<24x256x32xbf16>
    "tpu.trace_start"() <{level = 10 : i32, message = "cbp,cph->cbh"}> : () -> ()
    %cst_16 = arith.constant dense<0.000000e+00> : vector<24x2x32xf32>
    %27 = tpu.matmul %25, %26, %cst_16 {dimension_numbers = #tpu.dot_dimension_numbers<[2], [1], [1], [2], [0, 0, 0, 1, 1, 2], [0], [0]>} : vector<24x2x256xbf16>, vector<24x256x32xbf16>, vector<24x2x32xf32> -> vector<24x2x32xf32>
    "tpu.trace_stop"() : () -> ()
    %cst_17 = arith.constant dense<0.000000e+00> : vector<2x32xf32>
    %28 = vector.multi_reduction <add>, %27, %cst_17 [0] : vector<24x2x32xf32> to vector<2x32xf32>
    %c0_18 = arith.constant 0 : index
    %c0_19 = arith.constant 0 : index
    %29 = vector.load %arg10[%c0_18, %c0_19] : memref<2x32xf32, #tpu.memory_space<vmem>>, vector<2x32xf32>
    %30 = arith.addf %29, %28 : vector<2x32xf32>
    %c0_20 = arith.constant 0 : index
    %c0_21 = arith.constant 0 : index
    %31 = vector.load %arg10[%c0_20, %c0_21] : memref<2x32xf32, #tpu.memory_space<vmem>>, vector<2x32xf32>
    tpu.vector_store %arg10[%c0_20, %c0_21], %30 {strides = array<i32>} : memref<2x32xf32, #tpu.memory_space<vmem>>, vector<2x32xf32>,
    %c1_i32 = arith.constant 1 : i32
    %32 = arith.cmpi eq, %arg0, %c1_i32 : i32
    %33 = arith.extui %32 : i1 to i32
    %c0_i32_22 = arith.constant 0 : i32
    %34 = arith.cmpi ne, %33, %c0_i32_22 : i32
    scf.if %34 {
      %c0_23 = arith.constant 0 : index
      %c0_24 = arith.constant 0 : index
      %35 = vector.load %arg10[%c0_23, %c0_24] : memref<2x32xf32, #tpu.memory_space<vmem>>, vector<2x32xf32>
      %c0_25 = arith.constant 0 : index
      %c0_26 = arith.constant 0 : index
      %36 = vector.load %arg5[%c0_25, %c0_26] : memref<1x32xf32, #tpu.memory_space<vmem>>, vector<1x32xf32>
      %37 = vector.broadcast %36 : vector<1x32xf32> to vector<2x32xf32>
      %38 = arith.addf %35, %37 : vector<2x32xf32>
      %cst_27 = arith.constant 0.000000e+00 : f32
      %39 = vector.broadcast %cst_27 : f32 to vector<2x32xf32>
      %40 = arith.maximumf %38, %39 : vector<2x32xf32>
      %c0_28 = arith.constant 0 : index
      %c0_29 = arith.constant 0 : index
      %41 = vector.load %arg6[%c0_28, %c0_29] : memref<32x2xf32, #tpu.memory_space<vmem>>, vector<32x2xf32>
      %cst_30 = arith.constant dense<0.000000e+00> : vector<2x2xf32>
      %42 = tpu.matmul %40, %41, %cst_30 {dimension_numbers = #tpu.dot_dimension_numbers<[1], [0], [0], [1], [0, 0, 1, 1], [], []>} : vector<2x32xf32>, vector<32x2xf32>, vector<2x2xf32> -> vector<2x2xf32>
      %c0_31 = arith.constant 0 : index
      %c0_32 = arith.constant 0 : index
      %43 = vector.load %arg7[%c0_31, %c0_32] : memref<1x2xf32, #tpu.memory_space<vmem>>, vector<1x2xf32>
      %44 = vector.broadcast %43 : vector<1x2xf32> to vector<2x2xf32>
      %45 = arith.addf %42, %44 : vector<2x2xf32>
      %c0_33 = arith.constant 0 : index
      %c0_34 = arith.constant 0 : index
      %46 = vector.load %arg8[%c0_33, %c0_34] : memref<2x2xf32, #tpu.memory_space<vmem>>, vector<2x2xf32>
      tpu.vector_store %arg8[%c0_33, %c0_34], %45 {strides = array<i32>} : memref<2x2xf32, #tpu.memory_space<vmem>>, vector<2x2xf32>,
    } else {
    }
    return
  }
  func.func @transform_0(%arg0: i32) -> (i32, i32) {
    %c0_i32 = arith.constant 0 : i32
    %c0_i32_0 = arith.constant 0 : i32
    %c0_i32_1 = arith.constant 0 : i32
    return %c0_i32, %c0_i32_0 : i32, i32
  }
  func.func @transform_1(%arg0: i32) -> (i32, i32) {
    %c0_i32 = arith.constant 0 : i32
    %c0_i32_0 = arith.constant 0 : i32
    %c0_i32_1 = arith.constant 0 : i32
    return %c0_i32, %c0_i32_0 : i32, i32
  }
  func.func @transform_2(%arg0: i32) -> (i32, i32) {
    %c0_i32 = arith.constant 0 : i32
    %c0_i32_0 = arith.constant 0 : i32
    %c0_i32_1 = arith.constant 0 : i32
    return %c0_i32, %c0_i32_0 : i32, i32
  }
  func.func @transform_3(%arg0: i32) -> (i32, i32, i32) {
    %c0_i32 = arith.constant 0 : i32
    %c0_i32_0 = arith.constant 0 : i32
    %c0_i32_1 = arith.constant 0 : i32
    return %arg0, %c0_i32, %c0_i32_0 : i32, i32, i32
  }
  func.func @transform_4(%arg0: i32) -> (i32, i32) {
    %c0_i32 = arith.constant 0 : i32
    %c0_i32_0 = arith.constant 0 : i32
    %c0_i32_1 = arith.constant 0 : i32
    return %c0_i32, %c0_i32_0 : i32, i32
  }
  func.func @transform_5(%arg0: i32) -> (i32, i32) {
    %c0_i32 = arith.constant 0 : i32
    %c0_i32_0 = arith.constant 0 : i32
    %c0_i32_1 = arith.constant 0 : i32
    return %c0_i32, %c0_i32_0 : i32, i32
  }
  func.func @transform_6(%arg0: i32) -> (i32, i32) {
    %c0_i32 = arith.constant 0 : i32
    %c0_i32_0 = arith.constant 0 : i32
    %c0_i32_1 = arith.constant 0 : i32
    return %c0_i32, %c0_i32_0 : i32, i32
  }
  func.func @transform_7(%arg0: i32) -> (i32, i32) {
    %c0_i32 = arith.constant 0 : i32
    %c0_i32_0 = arith.constant 0 : i32
    %c0_i32_1 = arith.constant 0 : i32
    return %c0_i32, %c0_i32_0 : i32, i32
  }
}

</mosaic_0001>

<bundles_post_ra>
// kernel: tpu_custom_call.1
= control target key start
LH: loop header
LB: loop body
LE: loop exit
PB: predicated region body
PF: predicated region fallthrough
CT: control target
= control target key end

     0   :  { %12 = vsyncpa [#allocation5], 0  ;;  %s7356_s24 = smov 0   ;;  %s8267_s0 = inlined_call_operand.vmem [shape: f32[9,512], index: 0, kind: input, shape index: {}]   ;;  %s8268_s1 = inlined_call_operand.vmem [shape: f32[48,9], index: 1, kind: input, shape index: {}]   ;;  %s8269_s2 = inlined_call_operand.vmem [shape: f32[48,1], index: 2, kind: input, shape index: {}]   ;;  %s8270_s3 = inlined_call_operand.vmem [shape: bf16[48,256,32], index: 3, kind: input, shape index: {}]   ;;  %s8271_s4 = inlined_call_operand.vmem [shape: f32[1,32], index: 4, kind: input, shape index: {}]   ;;  %s8272_s5 = inlined_call_operand.vmem [shape: f32[32,2], index: 5, kind: input, shape index: {}]   ;;  %s8273_s6 = inlined_call_operand.vmem [shape: f32[1,2], index: 6, kind: input, shape index: {}]   ;;  %s8274_s7 = inlined_call_operand.hbm [shape: f32[2,2], index: 7, kind: output, shape index: {}]  }
   0x1 LB: > { %s7362_s25 = sadd.s32 4294967295, %s7305_s24   ;;  %p5837_p0 = scmp.ge.s32.totalorder %s7305_s24, 1  ;;  %s7305_s24 = sphi %s7356_s24, %s18_s24  }
   0x2   : > { %p235_p1 = scmp.lt.s32.totalorder %s7305_s24, 3 }
   0x4   : > { %p236_p2 = pnand %p5837_p0, %p235_p1 }
   0x5   : > { %s263_s26 = smul.u32 (!%p236_p2), 24, %s7362_s25  ;;  %p5840_p4 = scmp.ne.s32.totalorder (!%p236_p2), %s7362_s25, 0 }
   0x6   : > { %239 = sbr.rel (%p236_p2) target bundleno = 1106 (0x452), region = 48 }
   0x7   : > { %p264_p3 = scmp.lt.s32.totalorder (!%p236_p2), %s263_s26, 47 }
   0xd   : > { %s265_s27 = scalar_select %p264_p3, %s263_s26, 47 }
   0xe   : > { %275 = sbr.rel (%p5840_p4) target bundleno = 21 (0x15), region = 52  ;;  %vm276_vm0 = vcmask (!%p5840_p4), 254976   ;;  %v7307_v0 = vmov (!%p5840_p4), 0.0  }
   0xf   : > { %s6297_s28 = sshll.u32 %s265_s27, 7  ;;  %277 = vst.msk [vmem:[#allocation3] sm:$0x3] (!%p5840_p4), %vm276_vm0, %v7307_v0 }
  0x10   : > { %s7370_s8 = scalar_lea.vmem %s8270_s3, %s6297_s28 }
  0x15 PF: > { %v287_v1 = vld [vmem:[%s8267_s0 + $0x8] sm:$0xff]  ;;  %vm319_vm1 = vcmask 1040384   ;;  %vm7308_vm2 = vmmov 1   ;;  %v289_v5 = vld [vmem:[%s8267_s0 + $0x18] sm:$0xff]  ;;  %v286_v8 = vld [vmem:[%s8267_s0] sm:$0xff]  ;;  %v7309_v10 = vmov 0.0   ;;  %s7401_s23 = scalar_lea.vmem %s8268_s1, %s263_s26  ;;  %s7406_s29 = scalar_lea.vmem %s8269_s2, %s263_s26  ;;  %v523_v58 = vlaneseq }
  0x16   : > { %v291_v2 = vld [vmem:[%s8267_s0 + $0x28] sm:$0x1]  ;;  %vm7380_vm3 = vmpackc.low %vm319_vm1, %vm7308_vm2  ;;  %v293_v6 = vld [vmem:[%s8267_s0 + $0x38] sm:$0x1]  ;;  %396 = vmatprep.mubr.f32.mxu0 %v7309_v10  ;;  %479 = vmatprep.mubr.f32.mxu1 %v7309_v10  ;;  %v7310_v14 = vmov 0   ;;  %vm309_vm4 = vcmask 72704  }
  0x17   : > { %v6842_v3 = vpack.c.bf16 %v291_v2, %v287_v1  ;;  %v6848_v7 = vpack.c.bf16 %v293_v6, %v289_v5  ;;  %v290_v9 = vld [vmem:[%s8267_s0 + $0x20] sm:$0x1]  ;;  %v288_v12 = vld [vmem:[%s8267_s0 + $0x10] sm:$0xff]  ;;  %6883 = vset.pattern.permute.xlu0 %v7310_v14  ;;  %6884 = vset.pattern.permute.xlu1 %v7310_v14  ;;  %v284_v18 = vld [vmem:[%s7406_s29 + $0x8] sm:$0xff]  ;;  %v7311_v56 = vmov 1966171168  }
  0x18   : > { %v6845_v11 = vpack.c.bf16 %v290_v9, %v286_v8  ;;  %v292_v13 = vld [vmem:[%s8267_s0 + $0x30] sm:$0x1]  ;;  %v279_v16 = vld [vmem:[%s7401_s23] sm:$0xff]  ;;  %v280_v19 = vld [vmem:[%s7401_s23 + $0x8] sm:$0xff]  ;;  %v521_v57 = vunpack.c.l.s4 %v7311_v56  ;;  %v524_v62 = vshrl.u32 %v523_v58, 7  ;;  %vm668_vm7 = vcmask 1041409  }
  0x19   : > { %6844 = vmatprep.subr.msk.bf16.mxu0 %vm7380_vm3, %v6842_v3  ;;  %6850 = vmatprep.subr.msk.bf16.mxu1 %vm7380_vm3, %v6848_v7  ;;  %v6851_v15 = vpack.c.bf16 %v292_v13, %v288_v12  ;;  %v283_v17 = vld [vmem:[%s7406_s29] sm:$0xff]  ;;  %v6889_v24 = vld [vmem:[%s7370_s8 + $0x48] sm:$0xff]   ;;  %v6893_v28 = vld [vmem:[%s7370_s8 + $0x50] sm:$0xff]   ;;  %vm666_vm5 = vsmask.f32 256  ;;  %vm5632_vm0 = vcmask 254976  }
  0x1a   : > { %6847 = vmatpush1.bf16.msk.msra.mxu0 %vm7380_vm3, %v6845_v11  ;;  %296 = vperm.xlu0 %6883, %v283_v17   ;;  %v6885_v20 = vld [vmem:[%s7370_s8 + $0x40] sm:$0xff]   ;;  %v6890_v25 = vld [vmem:[%s7370_s8 + $0x8] sm:$0xff]   ;;  %v6894_v29 = vld [vmem:[%s7370_s8 + $0x10] sm:$0xff]   ;;  %v522_v61 = vunpack.c.0.s8 %v521_v57  ;;  %vm669_vm6 = vsmask.f32 1280  ;;  %p6289_p5 = scmp.ne.s32.totalorder %s7362_s25, 1 }
  0x1b   : > { %6853 = vmatpush1.bf16.msk.msra.mxu1 %vm7380_vm3, %v6851_v15  ;;  %6298 = vmatprep.subr.bf16.mxu0 %v6885_v20  ;;  %v6886_v21 = vld [vmem:[%s7370_s8] sm:$0xff]   ;;  %v6891_v26 = vld [vmem:[%s7370_s8 + $0xc8] sm:$0xff]   ;;  %v6895_v30 = vld [vmem:[%s7370_s8 + $0xd0] sm:$0xff]   ;;  %vm899_vm10 = vsmask.f32 7938  ;;  %vm5708_vm2 = vcmask (!%p6289_p5), 261120  }
  0x1c   : > { %v6887_v22 = vld [vmem:[%s7370_s8 + $0xc0] sm:$0xff]   ;;  %v6892_v27 = vld [vmem:[%s7370_s8 + $0x88] sm:$0xff]   ;;  %v6896_v31 = vld [vmem:[%s7370_s8 + $0x90] sm:$0xff]   ;;  %vm901_vm13 = vsmask.f32 7942  ;;  %vm5782_vm3 = vcmask (!%p6289_p5), 9216  }
  0x1d   : > { %5843 = vmatmul.mubr.msk.f32.vlgmr.msra.gmra.mrb[0].mxu0 %vm309_vm4, %v279_v16  ;;  %v6888_v23 = vld [vmem:[%s7370_s8 + $0x80] sm:$0xff]   ;;  %6320 = vmatprep.subr.bf16.mxu1 %v6887_v22  ;;  %v6897_v32 = vld [vmem:[%s7370_s8 + $0x58] sm:$0xff]   ;;  %v6905_v40 = vld [vmem:[%s7370_s8 + $0x68] sm:$0xff]  }
  0x1e   : > { %5848 = vmatmul.mubr.msk.f32.vlgmr.msra.gmra.mrb[0].mxu1 %vm309_vm4, %v279_v16  ;;  %402 = vmatprep.mubr.f32.mxu0 %v7309_v10  ;;  %v6898_v33 = vld [vmem:[%s7370_s8 + $0x18] sm:$0xff]   ;;  %v6901_v36 = vld [vmem:[%s7370_s8 + $0x60] sm:$0xff]   ;;  %v6906_v41 = vld [vmem:[%s7370_s8 + $0x28] sm:$0xff]  }
  0x1f   : > { %485 = vmatprep.mubr.f32.mxu1 %v7309_v10  ;;  %301 = vperm.xlu0 %6883, %v284_v18   ;;  %v6899_v34 = vld [vmem:[%s7370_s8 + $0xd8] sm:$0xff]   ;;  %v6902_v37 = vld [vmem:[%s7370_s8 + $0x20] sm:$0xff]   ;;  %v281_v42 = vld [vmem:[%s7401_s23 + $0x10] sm:$0xff] }
  0x20   : > { %6299 = vmatpush3.bf16.msra.mxu0 %v6886_v21  ;;  %6321 = vmatpush3.bf16.msra.mxu1 %v6888_v23  ;;  %v6900_v35 = vld [vmem:[%s7370_s8 + $0x98] sm:$0xff]   ;;  %v6903_v38 = vld [vmem:[%s7370_s8 + $0xe0] sm:$0xff]   ;;  %v6907_v43 = vld [vmem:[%s7370_s8 + $0xe8] sm:$0xff]  }
  0x21   : > { %5844 = vmatmul.mubr.msk.f32.gmra.mrb[2].mxu0 %vm309_vm4, %v280_v19  ;;  %6300 = vmatprep.subr.bf16.mxu0 %v6889_v24  ;;  %v6904_v39 = vld [vmem:[%s7370_s8 + $0xa0] sm:$0xff]   ;;  %v6908_v44 = vld [vmem:[%s7370_s8 + $0xa8] sm:$0xff]   ;;  %v6909_v45 = vld [vmem:[%s7370_s8 + $0x70] sm:$0xff]  }
  0x22   : > { %5849 = vmatmul.mubr.msk.f32.gmra.mrb[2].mxu1 %vm309_vm4, %v280_v19  ;;  %408 = vmatprep.mubr.f32.mxu0 %v7309_v10  ;;  %v6910_v46 = vld [vmem:[%s7370_s8 + $0x30] sm:$0xff]   ;;  %v6913_v48 = vld [vmem:[%s7370_s8 + $0x78] sm:$0xff]   ;;  %v6917_v52 = vld [vmem:[%s7370_s8 + $0x140] sm:$0xff]  }
  0x23   : > { %491 = vmatprep.mubr.f32.mxu1 %v7309_v10  ;;  %6322 = vmatprep.subr.bf16.mxu1 %v6891_v26  ;;  %v6911_v47 = vld [vmem:[%s7370_s8 + $0xf0] sm:$0xff]   ;;  %v6915_v50 = vld [vmem:[%s7370_s8 + $0xf8] sm:$0xff]   ;;  %v6919_v54 = vld [vmem:[%s7370_s8 + $0x1c0] sm:$0xff]   ;;  %v7466_v10 = vsub.s32 %v522_v61, %v524_v62 }
  0x24   : > { %6301 = vmatpush3.bf16.msra.mxu0 %v6890_v25  ;;  %6323 = vmatpush3.bf16.msra.mxu1 %v6892_v27  ;;  %v6912_v49 = vld [vmem:[%s7370_s8 + $0xb0] sm:$0xff]   ;;  %v6914_v51 = vld [vmem:[%s7370_s8 + $0x38] sm:$0xff]   ;;  %vm7470_vm8 = vmand %vm319_vm1, %vm666_vm5 }
  0x25   : > { %6302 = vmatprep.subr.bf16.mxu0 %v6893_v28  ;;  %6324 = vmatprep.subr.bf16.mxu1 %v6895_v30  ;;  %v6916_v53 = vld [vmem:[%s7370_s8 + $0xb8] sm:$0xff]   ;;  %v285_v55 = vld [vmem:[%s7406_s29 + $0x10] sm:$0xff]  ;;  %vm670_vm9 = vmand %vm668_vm7, %vm669_vm6 }
  0x26   : > { %5845 = vmatmul.mubr.msk.f32.gmra.mrb[4].mxu0 %vm309_vm4, %v281_v42  ;;  %5850 = vmatmul.mubr.msk.f32.gmra.mrb[4].mxu1 %vm309_vm4, %v281_v42  ;;  %vm7480_vm11 = vmor %vm670_vm9, %vm7470_vm8  ;;  %v675_v42 = vld [vmem:[#allocation2 + $0x2] sm:$0x3]  ;;  %v687_v56 = vld [vmem:[#allocation2 + $0xa] sm:$0x3] }
  0x27   : > { %306 = vperm.xlu1 %6884, %v285_v55   ;;  %vm7486_vm12 = vmand %vm319_vm1, %vm899_vm10  ;;  %v690_v57 = vld [vmem:[#allocation2 + $0xc] sm:$0x3]  ;;  %vm7313_vm1 = vmmov (!%p6289_p5), 0  }
  0x28   : > { %6303 = vmatpush3.bf16.msra.mxu0 %v6894_v29  ;;  %6325 = vmatpush3.bf16.msra.mxu1 %v6896_v31  ;;  %vm7510_vm14 = vmand %vm668_vm7, %vm901_vm13 }
  0x29   : > { %6304 = vmatprep.subr.bf16.mxu0 %v6897_v32  ;;  %6326 = vmatprep.subr.bf16.mxu1 %v6899_v34  ;;  %v672_v34 = vld [vmem:[#allocation2] sm:$0x3]  ;;  %vm7535_vm15 = vmor %vm7510_vm14, %vm7486_vm12 }
  0x2c   : > { %6305 = vmatpush3.bf16.msra.mxu0 %v6898_v33  ;;  %6327 = vmatpush3.bf16.msra.mxu1 %v6900_v35 }
  0x2d   : > { %6306 = vmatprep.subr.bf16.mxu0 %v6901_v36  ;;  %6328 = vmatprep.subr.bf16.mxu1 %v6903_v38 }
  0x30   : > { %6307 = vmatpush3.bf16.msra.mxu0 %v6902_v37  ;;  %6329 = vmatpush3.bf16.msra.mxu1 %v6904_v39 }
  0x31   : > { %6308 = vmatprep.subr.bf16.mxu0 %v6905_v40  ;;  %6330 = vmatprep.subr.bf16.mxu1 %v6907_v43  ;;  %v678_v43 = vld [vmem:[#allocation2 + $0x4] sm:$0x3] }
  0x34   : > { %6309 = vmatpush3.bf16.msra.mxu0 %v6906_v41  ;;  %6331 = vmatpush3.bf16.msra.mxu1 %v6908_v44  ;;  %v681_v44 = vld [vmem:[#allocation2 + $0x6] sm:$0x3] }
  0x35   : > { %6310 = vmatprep.subr.bf16.mxu0 %v6909_v45  ;;  %6332 = vmatprep.subr.bf16.mxu1 %v6911_v47  ;;  %v684_v45 = vld [vmem:[#allocation2 + $0x8] sm:$0x3] }
  0x38   : > { %6311 = vmatpush3.bf16.msra.mxu0 %v6910_v46  ;;  %6333 = vmatpush3.bf16.msra.mxu1 %v6912_v49 }
  0x39   : > { %6312 = vmatprep.subr.bf16.mxu0 %v6913_v48  ;;  %6334 = vmatprep.subr.bf16.mxu1 %v6915_v50 }
  0x3c   : > { %6313 = vmatpush3.bf16.msra.mxu0 %v6914_v51  ;;  %6335 = vmatpush3.bf16.msra.mxu1 %v6916_v53 }
  0x3d   : > { %6342 = vmatprep.subr.bf16.mxu0 %v6917_v52  ;;  %6364 = vmatprep.subr.bf16.mxu1 %v6919_v54 }
  0x99   : > { %v297_v59 = vpop.permute.xlu0 %296 }
  0x9e   : > { %v302_v8 = vpop.permute.xlu0 %301 }
  0xf0   : > { %v398_v60 = vpop.f32.mrb[0].mxu0 }
  0xf1   : > { %v399_v63 = vadd.f32 %v398_v60, %v297_v59  ;;  %v481_v0 = vpop.f32.mrb[0].mxu1  ;;  %v400_v1 = vpop.f32.mrb[1].mxu0 }
  0xf2   : > { %v482_v2 = vadd.f32 %v481_v0, %v297_v59  ;;  %v401_v3 = vadd.f32 %v400_v1, %v297_v59  ;;  %v483_v4 = vpop.f32.mrb[1].mxu1 }
  0xf3   : > { %v498_v5 = vmax.f32 %v399_v63, 0.0  ;;  %v484_v6 = vadd.f32 %v483_v4, %v297_v59 }
  0xf4   : > { %v500_v7 = vmax.f32 %v482_v2, 0.0  ;;  %v499_v9 = vmax.f32 %v401_v3, 0.0  ;;  %v404_v11 = vpop.f32.mrb[2].mxu0  ;;  %v693_v3 = vld [vmem:[#allocation2 + $0xe] sm:$0x3] }
  0xf5   : > { %v501_v12 = vmax.f32 %v484_v6, 0.0  ;;  %v405_v13 = vadd.f32 %v404_v11, %v302_v8  ;;  %v487_v14 = vpop.f32.mrb[2].mxu1  ;;  %v406_v15 = vpop.f32.mrb[3].mxu0 }
  0xf6   : > { %v5851_v17 = vpack.c.bf16 %v499_v9, %v498_v5  ;;  %v488_v18 = vadd.f32 %v487_v14, %v302_v8  ;;  %v407_v19 = vadd.f32 %v406_v15, %v302_v8  ;;  %v489_v20 = vpop.f32.mrb[3].mxu1 }
  0xf7   : > { %v5866_v21 = vpack.c.bf16 %v501_v12, %v500_v7  ;;  %v502_v22 = vmax.f32 %v405_v13, 0.0  ;;  %v490_v23 = vadd.f32 %v489_v20, %v302_v8  ;;  %v7042_v13 = vld [vmem:[%s7370_s8 + $0x438] sm:$0xff]  }
  0xf8   : > { %v526_v24 = vrot.slane %v5851_v17, %v7466_v10  ;;  %v504_v25 = vmax.f32 %v488_v18, 0.0  ;;  %v503_v26 = vmax.f32 %v407_v19, 0.0 }
  0xf9   : > { %v760_v27 = vrot.slane %v5866_v21, %v7466_v10  ;;  %v505_v28 = vmax.f32 %v490_v23, 0.0 }
  0xfa   : > { %v534_v30 = vcombine.high %v526_v24, %v526_v24  ;;  %v542_v31 = vrot.slane %v526_v24, %v7466_v10  ;;  %v5852_v32 = vpack.c.bf16 %v503_v26, %v502_v22 }
  0xfb   : > { %v768_v35 = vcombine.high %v760_v27, %v760_v27  ;;  %v7491_v36 = vrot.slane %v760_v27, %v7466_v10  ;;  %v5867_v37 = vpack.c.bf16 %v505_v28, %v504_v25 }
  0xfc   : > { %v556_v38 = vrot.slane %v534_v30, %v7466_v10  ;;  %v564_v39 = vcombine.high %v542_v31, %v542_v31  ;;  %v594_v40 = vunpack.i.h.s16 %v542_v31  ;;  %v5854_v41 = vpack.i.b16 %v542_v31, %v542_v31 }
  0xfd   : > { %v7495_v46 = vrot.slane %v768_v35, %v7466_v10  ;;  %v7499_v47 = vcombine.high %v7491_v36, %v7491_v36  ;;  %v828_v48 = vunpack.i.h.s16 %v7491_v36  ;;  %v5869_v14 = vpack.i.b16 %v7491_v36, %v7491_v36 }
  0xfe   : > { %v566_v49 = vcombine.high %v556_v38, %v556_v38  ;;  %v596_v50 = vunpack.i.h.s16 %v556_v38  ;;  %v598_v51 = vunpack.i.h.s16 %v564_v39  ;;  %v618_v52 = vpack.i.b16 %v594_v40, %v594_v40 }
  0xff   : > { %v5855_v53 = vpack.i.b16 %v556_v38, %v556_v38  ;;  %v5856_v54 = vpack.i.b16 %v564_v39, %v564_v39  ;;  %v673_v55 = vsel %vm7480_vm11, %v5854_v41, %v672_v34  ;;  %v7506_v58 = vcombine.high %v7495_v46, %v7495_v46  ;;  %v696_v38 = vld [vmem:[#allocation2 + $0x10] sm:$0x3]  ;;  %v699_v39 = vld [vmem:[#allocation2 + $0x12] sm:$0x3] }
 0x100   : > { %v600_v59 = vunpack.i.h.s16 %v566_v49  ;;  %v620_v60 = vpack.i.b16 %v596_v50, %v596_v50  ;;  %v622_v61 = vpack.i.b16 %v598_v51, %v598_v51  ;;  %v5857_v62 = vpack.i.b16 %v566_v49, %v566_v49  ;;  %674 = vst [vmem:[#allocation2] sm:$0x3] %v673_v55  ;;  %v702_v51 = vld [vmem:[#allocation2 + $0x14] sm:$0x3] }
 0x101   : > { %v676_v0 = vsel %vm7480_vm11, %v618_v52, %v675_v42  ;;  %v679_v1 = vsel %vm7480_vm11, %v5855_v53, %v678_v43  ;;  %v685_v2 = vsel %vm7480_vm11, %v5856_v54, %v684_v45  ;;  %v830_v4 = vunpack.i.h.s16 %v7495_v46  ;;  %v705_v52 = vld [vmem:[#allocation2 + $0x16] sm:$0x3]  ;;  %v708_v53 = vld [vmem:[#allocation2 + $0x18] sm:$0x3] }
 0x102   : > { %v624_v5 = vpack.i.b16 %v600_v59, %v600_v59  ;;  %677 = vst [vmem:[#allocation2 + $0x2] sm:$0x3] %v676_v0  ;;  %680 = vst [vmem:[#allocation2 + $0x4] sm:$0x3] %v679_v1  ;;  %v682_v6 = vsel %vm7480_vm11, %v620_v60, %v681_v44  ;;  %v688_v7 = vsel %vm7480_vm11, %v622_v61, %v687_v56  ;;  %v832_v11 = vunpack.i.h.s16 %v7499_v47  ;;  %v714_v59 = vld [vmem:[#allocation2 + $0x1c] sm:$0x3] }
 0x103   : > { %686 = vst [vmem:[#allocation2 + $0x8] sm:$0x3] %v685_v2  ;;  %v691_v8 = vsel %vm7480_vm11, %v5857_v62, %v690_v57  ;;  %683 = vst [vmem:[#allocation2 + $0x6] sm:$0x3] %v682_v6  ;;  %v834_v12 = vunpack.i.h.s16 %v7506_v58  ;;  %v533_v15 = vrot.slane %v5852_v32, %v7466_v10  ;;  %v767_v16 = vrot.slane %v5867_v37, %v7466_v10  ;;  %v711_v0 = vld [vmem:[#allocation2 + $0x1a] sm:$0x3] }
 0x104   : > { %689 = vst [vmem:[#allocation2 + $0xa] sm:$0x3] %v688_v7  ;;  %692 = vst [vmem:[#allocation2 + $0xc] sm:$0x3] %v691_v8  ;;  %v694_v9 = vsel %vm7480_vm11, %v624_v5, %v693_v3  ;;  %v852_v17 = vpack.i.b16 %v828_v48, %v828_v48  ;;  %v5870_v18 = vpack.i.b16 %v7495_v46, %v7495_v46  ;;  %v717_v1 = vld [vmem:[#allocation2 + $0x1e] sm:$0x3] }
 0x105   : > { %695 = vst [vmem:[#allocation2 + $0xe] sm:$0x3] %v694_v9  ;;  %v854_v19 = vpack.i.b16 %v830_v4, %v830_v4  ;;  %v5871_v20 = vpack.i.b16 %v7499_v47, %v7499_v47  ;;  %v5872_v21 = vpack.i.b16 %v7506_v58, %v7506_v58  ;;  %v535_v23 = vcombine.high %v533_v15, %v533_v15 }
 0x106   : > { %v549_v24 = vrot.slane %v533_v15, %v7466_v10  ;;  %v769_v25 = vcombine.high %v767_v16, %v767_v16  ;;  %v856_v26 = vpack.i.b16 %v832_v11, %v832_v11  ;;  %v858_v27 = vpack.i.b16 %v834_v12, %v834_v12 }
 0x107   : > { %v904_v22 = vld [vmem:[#allocation2] sm:$0x3]  ;;  %v7553_v30 = vrot.slane %v767_v16, %v7466_v10  ;;  %v563_v34 = vrot.slane %v535_v23, %v7466_v10 }
 0x108   : > { %v905_v28 = vsel %vm7535_vm15, %v5869_v14, %v904_v22  ;;  %v565_v35 = vcombine.high %v549_v24, %v549_v24  ;;  %v602_v36 = vunpack.i.h.s16 %v549_v24  ;;  %v5858_v37 = vpack.i.b16 %v549_v24, %v549_v24 }
 0x109   : > { %906 = vst [vmem:[#allocation2] sm:$0x3] %v905_v28  ;;  %v907_v31 = vld [vmem:[#allocation2 + $0x2] sm:$0x3]  ;;  %v910_v32 = vld [vmem:[#allocation2 + $0x4] sm:$0x3]  ;;  %v7563_v46 = vrot.slane %v769_v25, %v7466_v10  ;;  %v567_v50 = vcombine.high %v563_v34, %v563_v34  ;;  %v604_v55 = vunpack.i.h.s16 %v563_v34  ;;  %v5859_v58 = vpack.i.b16 %v563_v34, %v563_v34 }
 0x10a   : > { %v916_v33 = vld [vmem:[#allocation2 + $0x8] sm:$0x3]  ;;  %v908_v40 = vsel %vm7535_vm15, %v852_v17, %v907_v31  ;;  %v911_v41 = vsel %vm7535_vm15, %v5870_v18, %v910_v32  ;;  %v913_v42 = vld [vmem:[#allocation2 + $0x6] sm:$0x3]  ;;  %v606_v56 = vunpack.i.h.s16 %v565_v35  ;;  %v626_v57 = vpack.i.b16 %v602_v36, %v602_v36 }
 0x10b   : > { %v917_v43 = vsel %vm7535_vm15, %v5871_v20, %v916_v33  ;;  %v919_v44 = vld [vmem:[#allocation2 + $0xa] sm:$0x3]  ;;  %v922_v45 = vld [vmem:[#allocation2 + $0xc] sm:$0x3]  ;;  %909 = vst [vmem:[#allocation2 + $0x2] sm:$0x3] %v908_v40  ;;  %v914_v47 = vsel %vm7535_vm15, %v854_v19, %v913_v42  ;;  %v608_v61 = vunpack.i.h.s16 %v567_v50  ;;  %v5860_v62 = vpack.i.b16 %v565_v35, %v565_v35 }
 0x10c   : > { %912 = vst [vmem:[#allocation2 + $0x4] sm:$0x3] %v911_v41  ;;  %918 = vst [vmem:[#allocation2 + $0x8] sm:$0x3] %v917_v43  ;;  %v920_v48 = vsel %vm7535_vm15, %v856_v26, %v919_v44  ;;  %v923_v49 = vsel %vm7535_vm15, %v5872_v21, %v922_v45  ;;  %v925_v54 = vld [vmem:[#allocation2 + $0xe] sm:$0x3]  ;;  %v5861_v63 = vpack.i.b16 %v567_v50, %v567_v50  ;;  %v836_v18 = vunpack.i.h.s16 %v7553_v30 }
 0x10d   : > { %915 = vst [vmem:[#allocation2 + $0x6] sm:$0x3] %v914_v47  ;;  %921 = vst [vmem:[#allocation2 + $0xa] sm:$0x3] %v920_v48  ;;  %v926_v60 = vsel %vm7535_vm15, %v858_v27, %v925_v54  ;;  %v628_v2 = vpack.i.b16 %v604_v55, %v604_v55  ;;  %v630_v3 = vpack.i.b16 %v606_v56, %v606_v56  ;;  %v838_v19 = vunpack.i.h.s16 %v7563_v46 }
 0x10e   : > { %924 = vst [vmem:[#allocation2 + $0xc] sm:$0x3] %v923_v49  ;;  %927 = vst [vmem:[#allocation2 + $0xe] sm:$0x3] %v926_v60  ;;  %v697_v4 = vsel %vm7480_vm11, %v5858_v37, %v696_v38  ;;  %v700_v5 = vsel %vm7480_vm11, %v626_v57, %v699_v39  ;;  %v632_v6 = vpack.i.b16 %v608_v61, %v608_v61  ;;  %v6918_v37 = vld [vmem:[%s7370_s8 + $0x100] sm:$0xff]   ;;  %v6921_v39 = vld [vmem:[%s7370_s8 + $0x148] sm:$0xff]  }
 0x10f   : > { %698 = vst [vmem:[#allocation2 + $0x10] sm:$0x3] %v697_v4  ;;  %701 = vst [vmem:[#allocation2 + $0x12] sm:$0x3] %v700_v5  ;;  %v703_v7 = vsel %vm7480_vm11, %v5859_v58, %v702_v51  ;;  %v709_v8 = vsel %vm7480_vm11, %v5860_v62, %v708_v53  ;;  %v715_v9 = vsel %vm7480_vm11, %v5861_v63, %v714_v59  ;;  %v6920_v38 = vld [vmem:[%s7370_s8 + $0x180] sm:$0xff]   ;;  %v6923_v59 = vld [vmem:[%s7370_s8 + $0x1c8] sm:$0xff]  }
 0x110   : > { %704 = vst [vmem:[#allocation2 + $0x14] sm:$0x3] %v703_v7  ;;  %v706_v11 = vsel %vm7480_vm11, %v628_v2, %v705_v52  ;;  %710 = vst [vmem:[#allocation2 + $0x18] sm:$0x3] %v709_v8  ;;  %v712_v12 = vsel %vm7480_vm11, %v630_v3, %v711_v0  ;;  %v799_v14 = vcombine.high %v7553_v30, %v7553_v30  ;;  %v6922_v63 = vld [vmem:[%s7370_s8 + $0x108] sm:$0xff]   ;;  %v6927_v3 = vld [vmem:[%s7370_s8 + $0x1d0] sm:$0xff]  }
 0x111   : > { %716 = vst [vmem:[#allocation2 + $0x1c] sm:$0x3] %v715_v9  ;;  %v801_v15 = vcombine.high %v7563_v46, %v7563_v46  ;;  %v5881_v16 = vld.sshfl [vmem:[#allocation2] sm:$0x11 pattern:$0x75316420]  ;;  %v718_v17 = vsel %vm7480_vm11, %v632_v6, %v717_v1  ;;  %v5873_v23 = vpack.i.b16 %v7553_v30, %v7553_v30  ;;  %v5874_v24 = vpack.i.b16 %v7563_v46, %v7563_v46 }
 0x112   : > { %707 = vst [vmem:[#allocation2 + $0x16] sm:$0x3] %v706_v11  ;;  %713 = vst [vmem:[#allocation2 + $0x1a] sm:$0x3] %v712_v12  ;;  %v840_v20 = vunpack.i.h.s16 %v799_v14  ;;  %v5875_v25 = vpack.i.b16 %v799_v14, %v799_v14  ;;  %v1776_v26 = vcombine.high %v5881_v16, %v5881_v16  ;;  %v860_v28 = vpack.i.b16 %v836_v18, %v836_v18  ;;  %v6925_v1 = vld [vmem:[%s7370_s8 + $0x150] sm:$0xff]   ;;  %v6924_v2 = vld [vmem:[%s7370_s8 + $0x188] sm:$0xff]  }
 0x113   : > { %719 = vst [vmem:[#allocation2 + $0x1e] sm:$0x3] %v718_v17  ;;  %v842_v21 = vunpack.i.h.s16 %v801_v15  ;;  %v5898_v22 = vld.sshfl [vmem:[#allocation2 + $0x2] sm:$0x11 pattern:$0x75316420]  ;;  %v862_v31 = vpack.i.b16 %v838_v19, %v838_v19  ;;  %v5876_v32 = vpack.i.b16 %v801_v15, %v801_v15  ;;  %v1783_v44 = vrot.slane %v5881_v16, %v7466_v10 }
 0x114   : > { %v7599_v27 = vld.sshfl [vmem:[#allocation2 + $0x4] sm:$0x11 pattern:$0x75316420]  ;;  %v1937_v33 = vcombine.high %v5898_v22, %v5898_v22  ;;  %v864_v35 = vpack.i.b16 %v840_v20, %v840_v20  ;;  %v1790_v36 = vrot.slane %v1776_v26, %v7466_v10  ;;  %v1944_v45 = vrot.slane %v5898_v22, %v7466_v10  ;;  %v6926_v4 = vld [vmem:[%s7370_s8 + $0x110] sm:$0xff]   ;;  %v6929_v5 = vld [vmem:[%s7370_s8 + $0x158] sm:$0xff]  }
 0x115   : > { %v7601_v34 = vld.sshfl [vmem:[#allocation2 + $0x6] sm:$0x11 pattern:$0x75316420]  ;;  %v2098_v30 = vcombine.high %v7599_v27, %v7599_v27  ;;  %v866_v41 = vpack.i.b16 %v842_v21, %v842_v21  ;;  %v6928_v6 = vld [vmem:[%s7370_s8 + $0x190] sm:$0xff]   ;;  %v6931_v7 = vld [vmem:[%s7370_s8 + $0x1d8] sm:$0xff]  }
 0x116   : > { %v2259_v40 = vcombine.high %v7601_v34, %v7601_v34  ;;  %v928_v42 = vld [vmem:[#allocation2 + $0x10] sm:$0x3]  ;;  %v931_v43 = vld [vmem:[#allocation2 + $0x12] sm:$0x3]  ;;  %v1951_v46 = vrot.slane %v1937_v33, %v7466_v10  ;;  %1921 = vmatprep.mubr.bf16.mxu0 %v1790_v36  ;;  %v6930_v8 = vld [vmem:[%s7370_s8 + $0x118] sm:$0xff]  }
 0x117   : > { %v929_v47 = vsel %vm7535_vm15, %v5873_v23, %v928_v42  ;;  %v932_v48 = vsel %vm7535_vm15, %v860_v28, %v931_v43  ;;  %v934_v49 = vld [vmem:[#allocation2 + $0x14] sm:$0x3]  ;;  %v940_v50 = vld [vmem:[#allocation2 + $0x18] sm:$0x3]  ;;  %v2112_v52 = vrot.slane %v2098_v30, %v7466_v10  ;;  %1922 = vmatmul.mubr.bf16.vlgmr.msra.gmra.mrb[8].mxu0 %v1783_v44  ;;  %v6933_v9 = vld [vmem:[%s7370_s8 + $0x160] sm:$0xff]   ;;  %v2266_v42 = vrot.slane %v7601_v34, %v7466_v10 }
 0x118   : > { %v946_v51 = vld [vmem:[#allocation2 + $0x1c] sm:$0x3]  ;;  %v2273_v53 = vrot.slane %v2259_v40, %v7466_v10  ;;  %930 = vst [vmem:[#allocation2 + $0x10] sm:$0x3] %v929_v47  ;;  %933 = vst [vmem:[#allocation2 + $0x12] sm:$0x3] %v932_v48  ;;  %v935_v54 = vsel %vm7535_vm15, %v5874_v24, %v934_v49  ;;  %v941_v56 = vsel %vm7535_vm15, %v5875_v25, %v940_v50  ;;  %2082 = vmatprep.mubr.bf16.mxu1 %v1951_v46 }
 0x119   : > { %v937_v55 = vld [vmem:[#allocation2 + $0x16] sm:$0x3]  ;;  %v943_v57 = vld [vmem:[#allocation2 + $0x1a] sm:$0x3]  ;;  %v947_v58 = vsel %vm7535_vm15, %v5876_v32, %v946_v51  ;;  %936 = vst [vmem:[#allocation2 + $0x14] sm:$0x3] %v935_v54  ;;  %6343 = vmatpush3.bf16.msra.mxu0 %v6918_v37  ;;  %2243 = vmatprep.mubr.bf16.mxu0 %v2112_v52  ;;  %v2105_v40 = vrot.slane %v7599_v27, %v7466_v10 }
 0x11a   : > { %v938_v60 = vsel %vm7535_vm15, %v862_v31, %v937_v55  ;;  %942 = vst [vmem:[#allocation2 + $0x18] sm:$0x3] %v941_v56  ;;  %v944_v61 = vsel %vm7535_vm15, %v864_v35, %v943_v57  ;;  %948 = vst [vmem:[#allocation2 + $0x1c] sm:$0x3] %v947_v58  ;;  %v949_v62 = vld [vmem:[#allocation2 + $0x1e] sm:$0x3]  ;;  %2083 = vmatmul.mubr.bf16.vlgmr.msra.gmra.mrb[8].mxu1 %v1944_v45  ;;  %6344 = vmatprep.subr.bf16.mxu0 %v6921_v39 }
 0x11b   : > { %939 = vst [vmem:[#allocation2 + $0x16] sm:$0x3] %v938_v60  ;;  %945 = vst [vmem:[#allocation2 + $0x1a] sm:$0x3] %v944_v61  ;;  %v950_v0 = vsel %vm7535_vm15, %v866_v41, %v949_v62  ;;  %6365 = vmatpush3.bf16.msra.mxu1 %v6920_v38  ;;  %2404 = vmatprep.mubr.bf16.mxu1 %v2273_v53  ;;  %v6932_v11 = vld [vmem:[%s7370_s8 + $0x198] sm:$0xff]   ;;  %v6935_v12 = vld [vmem:[%s7370_s8 + $0x1e0] sm:$0xff]  }
 0x11c   : > { %951 = vst [vmem:[#allocation2 + $0x1e] sm:$0x3] %v950_v0  ;;  %6366 = vmatprep.subr.bf16.mxu1 %v6923_v59  ;;  %v6934_v14 = vld [vmem:[%s7370_s8 + $0x120] sm:$0xff]   ;;  %v6937_v16 = vld [vmem:[%s7370_s8 + $0x168] sm:$0xff]   ;;  %v6941_v20 = vld [vmem:[%s7370_s8 + $0x170] sm:$0xff]  }
 0x11d   : > { %6345 = vmatpush3.bf16.msra.mxu0 %v6922_v63  ;;  %v6936_v15 = vld [vmem:[%s7370_s8 + $0x1a0] sm:$0xff]   ;;  %v6938_v17 = vld [vmem:[%s7370_s8 + $0x128] sm:$0xff]   ;;  %v6942_v21 = vld [vmem:[%s7370_s8 + $0x130] sm:$0xff]  }
 0x11e   : > { %6346 = vmatprep.subr.bf16.mxu0 %v6925_v1  ;;  %v6939_v18 = vld [vmem:[%s7370_s8 + $0x1e8] sm:$0xff]   ;;  %v6943_v22 = vld [vmem:[%s7370_s8 + $0x1f0] sm:$0xff]   ;;  %v6945_v24 = vld [vmem:[%s7370_s8 + $0x178] sm:$0xff]  }
 0x11f   : > { %6367 = vmatpush3.bf16.msra.mxu1 %v6924_v2  ;;  %v6940_v19 = vld [vmem:[%s7370_s8 + $0x1a8] sm:$0xff]   ;;  %v6944_v23 = vld [vmem:[%s7370_s8 + $0x1b0] sm:$0xff]   ;;  %v6947_v25 = vld [vmem:[%s7370_s8 + $0x1f8] sm:$0xff]  }
 0x120   : > { %6368 = vmatprep.subr.bf16.mxu1 %v6927_v3  ;;  %v6946_v26 = vld [vmem:[%s7370_s8 + $0x138] sm:$0xff]   ;;  %v7658_v28 = vld.sshfl [vmem:[#allocation2 + $0x8] sm:$0x11 pattern:$0x75316420]  ;;  %v6949_v31 = vld [vmem:[%s7370_s8 + $0x240] sm:$0xff]  }
 0x121   : > { %6347 = vmatpush3.bf16.msra.mxu0 %v6926_v4  ;;  %v6948_v32 = vld [vmem:[%s7370_s8 + $0x1b8] sm:$0xff]   ;;  %v7662_v33 = vld.sshfl [vmem:[#allocation2 + $0xa] sm:$0x11 pattern:$0x75316420]  ;;  %v6950_v35 = vld [vmem:[%s7370_s8 + $0x200] sm:$0xff]   ;;  %v2420_v36 = vcombine.high %v7658_v28, %v7658_v28 }
 0x122   : > { %6348 = vmatprep.subr.bf16.mxu0 %v6929_v5  ;;  %v6951_v37 = vld [vmem:[%s7370_s8 + $0x2c0] sm:$0xff]   ;;  %v2581_v38 = vcombine.high %v7662_v33, %v7662_v33  ;;  %v6953_v39 = vld [vmem:[%s7370_s8 + $0x248] sm:$0xff]   ;;  %v6957_v46 = vld [vmem:[%s7370_s8 + $0x250] sm:$0xff]  }
 0x123   : > { %6369 = vmatpush3.bf16.msra.mxu1 %v6928_v6  ;;  %v6952_v30 = vld [vmem:[%s7370_s8 + $0x280] sm:$0xff]   ;;  %v2434_v41 = vrot.slane %v2420_v36, %v7466_v10  ;;  %v6954_v43 = vld [vmem:[%s7370_s8 + $0x208] sm:$0xff]   ;;  %v6958_v34 = vld [vmem:[%s7370_s8 + $0x210] sm:$0xff]  }
 0x124   : > { %6370 = vmatprep.subr.bf16.mxu1 %v6931_v7  ;;  %v6955_v44 = vld [vmem:[%s7370_s8 + $0x2c8] sm:$0xff]   ;;  %v2595_v27 = vrot.slane %v2581_v38, %v7466_v10  ;;  %v6959_v47 = vld [vmem:[%s7370_s8 + $0x2d0] sm:$0xff]   ;;  %v6961_v49 = vld [vmem:[%s7370_s8 + $0x258] sm:$0xff]  }
 0x125   : > { %6349 = vmatpush3.bf16.msra.mxu0 %v6930_v8  ;;  %v6956_v45 = vld [vmem:[%s7370_s8 + $0x288] sm:$0xff]   ;;  %v6960_v48 = vld [vmem:[%s7370_s8 + $0x290] sm:$0xff]   ;;  %v6962_v50 = vld [vmem:[%s7370_s8 + $0x218] sm:$0xff]  }
 0x126   : > { %6350 = vmatprep.subr.bf16.mxu0 %v6933_v9  ;;  %v6963_v51 = vld [vmem:[%s7370_s8 + $0x2d8] sm:$0xff]   ;;  %v6965_v53 = vld [vmem:[%s7370_s8 + $0x260] sm:$0xff]   ;;  %v6969_v57 = vld [vmem:[%s7370_s8 + $0x268] sm:$0xff]  }
 0x127   : > { %6371 = vmatpush3.bf16.msra.mxu1 %v6932_v11  ;;  %v6964_v52 = vld [vmem:[%s7370_s8 + $0x298] sm:$0xff]   ;;  %v6966_v54 = vld [vmem:[%s7370_s8 + $0x220] sm:$0xff]   ;;  %v6970_v58 = vld [vmem:[%s7370_s8 + $0x228] sm:$0xff]  }
 0x128   : > { %6372 = vmatprep.subr.bf16.mxu1 %v6935_v12  ;;  %v6967_v55 = vld [vmem:[%s7370_s8 + $0x2e0] sm:$0xff]   ;;  %v6971_v59 = vld [vmem:[%s7370_s8 + $0x2e8] sm:$0xff]   ;;  %v6973_v61 = vld [vmem:[%s7370_s8 + $0x270] sm:$0xff]  }
 0x129   : > { %6351 = vmatpush3.bf16.msra.mxu0 %v6934_v14  ;;  %v6968_v56 = vld [vmem:[%s7370_s8 + $0x2a0] sm:$0xff]   ;;  %v6972_v60 = vld [vmem:[%s7370_s8 + $0x2a8] sm:$0xff]   ;;  %v6974_v62 = vld [vmem:[%s7370_s8 + $0x230] sm:$0xff]  }
 0x12a   : > { %6352 = vmatprep.subr.bf16.mxu0 %v6937_v16  ;;  %v6975_v63 = vld [vmem:[%s7370_s8 + $0x2f0] sm:$0xff]   ;;  %v6977_v1 = vld [vmem:[%s7370_s8 + $0x278] sm:$0xff]   ;;  %v7704_v4 = vld.sshfl [vmem:[#allocation2 + $0xc] sm:$0x11 pattern:$0x75316420]  ;;  %v2427_v16 = vrot.slane %v7658_v28, %v7466_v10 }
 0x12b   : > { %6373 = vmatpush3.bf16.msra.mxu1 %v6936_v15  ;;  %v6976_v0 = vld [vmem:[%s7370_s8 + $0x2b0] sm:$0xff]   ;;  %v6979_v2 = vld [vmem:[%s7370_s8 + $0x2f8] sm:$0xff]   ;;  %v6981_v5 = vld [vmem:[%s7370_s8 + $0x340] sm:$0xff]   ;;  %v2742_v9 = vcombine.high %v7704_v4, %v7704_v4 }
 0x12c   : > { %6374 = vmatprep.subr.bf16.mxu1 %v6939_v18  ;;  %v6978_v3 = vld [vmem:[%s7370_s8 + $0x238] sm:$0xff]   ;;  %v7708_v7 = vld.sshfl [vmem:[#allocation2 + $0xe] sm:$0x11 pattern:$0x75316420]  ;;  %v6982_v8 = vld [vmem:[%s7370_s8 + $0x300] sm:$0xff]   ;;  %v2588_v18 = vrot.slane %v7662_v33, %v7466_v10 }
 0x12d   : > { %6353 = vmatpush3.bf16.msra.mxu0 %v6938_v17  ;;  %v6980_v6 = vld [vmem:[%s7370_s8 + $0x2b8] sm:$0xff]   ;;  %v6983_v11 = vld [vmem:[%s7370_s8 + $0x3c0] sm:$0xff]   ;;  %v2903_v14 = vcombine.high %v7708_v7, %v7708_v7  ;;  %v6985_v15 = vld [vmem:[%s7370_s8 + $0x348] sm:$0xff]   ;;  %v2756_v17 = vrot.slane %v2742_v9, %v7466_v10 }
 0x12e   : > { %6354 = vmatprep.subr.bf16.mxu0 %v6941_v20  ;;  %v6984_v12 = vld [vmem:[%s7370_s8 + $0x380] sm:$0xff]   ;;  %v6987_v20 = vld [vmem:[%s7370_s8 + $0x3c8] sm:$0xff]   ;;  %v6992_v28 = vld [vmem:[%s7370_s8 + $0x390] sm:$0xff]  }
 0x12f   : > { %6375 = vmatpush3.bf16.msra.mxu1 %v6940_v19  ;;  %v6986_v19 = vld [vmem:[%s7370_s8 + $0x308] sm:$0xff]   ;;  %v6996_v33 = vld [vmem:[%s7370_s8 + $0x398] sm:$0xff]   ;;  %v6998_v36 = vld [vmem:[%s7370_s8 + $0x320] sm:$0xff]  }
 0x130   : > { %6376 = vmatprep.subr.bf16.mxu1 %v6943_v22  ;;  %v6989_v22 = vld [vmem:[%s7370_s8 + $0x350] sm:$0xff]   ;;  %v7001_v38 = vld [vmem:[%s7370_s8 + $0x368] sm:$0xff]  }
 0x131   : > { %6355 = vmatpush3.bf16.msra.mxu0 %v6942_v21  ;;  %v2917_v21 = vrot.slane %v2903_v14, %v7466_v10  ;;  %v7017_v9 = vld [vmem:[%s7370_s8 + $0x448] sm:$0xff]   ;;  %v2749_v14 = vrot.slane %v7704_v4, %v7466_v10 }
 0x132   : > { %6356 = vmatprep.subr.bf16.mxu0 %v6945_v24  ;;  %v6991_v24 = vld [vmem:[%s7370_s8 + $0x3d0] sm:$0xff]  }
 0x133   : > { %6377 = vmatpush3.bf16.msra.mxu1 %v6944_v23  ;;  %v6988_v23 = vld [vmem:[%s7370_s8 + $0x388] sm:$0xff]  }
 0x134   : > { %6378 = vmatprep.subr.bf16.mxu1 %v6947_v25  ;;  %v6990_v25 = vld [vmem:[%s7370_s8 + $0x310] sm:$0xff]  }
 0x135   : > { %6357 = vmatpush3.bf16.msra.mxu0 %v6946_v26  ;;  %v6993_v26 = vld [vmem:[%s7370_s8 + $0x358] sm:$0xff]  }
 0x136   : > { %6386 = vmatprep.subr.bf16.mxu0 %v6949_v31  ;;  %v6995_v31 = vld [vmem:[%s7370_s8 + $0x3d8] sm:$0xff]  }
 0x137   : > { %6379 = vmatpush3.bf16.msra.mxu1 %v6948_v32  ;;  %v6994_v32 = vld [vmem:[%s7370_s8 + $0x318] sm:$0xff]  }
 0x138   : > { %2244 = vmatmul.mubr.bf16.vlgmr.msra.gmra.mrb[12].mxu0 %v2105_v40  ;;  %6408 = vmatprep.subr.bf16.mxu1 %v6951_v37  ;;  %v6999_v37 = vld [vmem:[%s7370_s8 + $0x3e0] sm:$0xff]   ;;  %v7003_v40 = vld [vmem:[%s7370_s8 + $0x3e8] sm:$0xff]  }
 0x139   : > { %6387 = vmatpush3.bf16.msra.mxu0 %v6950_v35  ;;  %2565 = vmatprep.mubr.bf16.mxu0 %v2434_v41  ;;  %v6997_v35 = vld [vmem:[%s7370_s8 + $0x360] sm:$0xff]   ;;  %v7004_v41 = vld [vmem:[%s7370_s8 + $0x3a8] sm:$0xff]  }
 0x13a   : > { %2405 = vmatmul.mubr.bf16.vlgmr.msra.gmra.mrb[12].mxu1 %v2266_v42  ;;  %6388 = vmatprep.subr.bf16.mxu0 %v6953_v39  ;;  %v7002_v39 = vld [vmem:[%s7370_s8 + $0x328] sm:$0xff]   ;;  %v7005_v42 = vld [vmem:[%s7370_s8 + $0x370] sm:$0xff]  }
 0x13b   : > { %6409 = vmatpush3.bf16.msra.mxu1 %v6952_v30  ;;  %2726 = vmatprep.mubr.bf16.mxu1 %v2595_v27  ;;  %v7000_v30 = vld [vmem:[%s7370_s8 + $0x3a0] sm:$0xff]   ;;  %v307_v27 = vpop.permute.xlu1 %306 }
 0x13c   : > { %6410 = vmatprep.subr.bf16.mxu1 %v6955_v44  ;;  %v7007_v44 = vld [vmem:[%s7370_s8 + $0x3f0] sm:$0xff]  }
 0x13d   : > { %6389 = vmatpush3.bf16.msra.mxu0 %v6954_v43  ;;  %v7006_v43 = vld [vmem:[%s7370_s8 + $0x330] sm:$0xff]  }
 0x13e   : > { %6390 = vmatprep.subr.bf16.mxu0 %v6957_v46  ;;  %v7009_v46 = vld [vmem:[%s7370_s8 + $0x378] sm:$0xff]  }
 0x13f   : > { %6411 = vmatpush3.bf16.msra.mxu1 %v6956_v45  ;;  %v7008_v45 = vld [vmem:[%s7370_s8 + $0x3b0] sm:$0xff]  }
 0x140   : > { %6412 = vmatprep.subr.bf16.mxu1 %v6959_v47  ;;  %v410_v47 = vpop.f32.mrb[4].mxu0 }
 0x141   : > { %6391 = vmatpush3.bf16.msra.mxu0 %v6958_v34  ;;  %v7748_v34 = vld.sshfl [vmem:[#allocation2 + $0x10] sm:$0x11 pattern:$0x75316420] }
 0x142   : > { %6392 = vmatprep.subr.bf16.mxu0 %v6961_v49  ;;  %v7011_v49 = vld [vmem:[%s7370_s8 + $0x3f8] sm:$0xff]  }
 0x143   : > { %6413 = vmatpush3.bf16.msra.mxu1 %v6960_v48  ;;  %v493_v48 = vpop.f32.mrb[4].mxu1 }
 0x144   : > { %6414 = vmatprep.subr.bf16.mxu1 %v6963_v51  ;;  %v412_v51 = vpop.f32.mrb[5].mxu0 }
 0x145   : > { %6393 = vmatpush3.bf16.msra.mxu0 %v6962_v50  ;;  %v411_v50 = vadd.f32 %v410_v47, %v307_v27 }
 0x146   : > { %6394 = vmatprep.subr.bf16.mxu0 %v6965_v53  ;;  %v495_v53 = vpop.f32.mrb[5].mxu1 }
 0x147   : > { %6415 = vmatpush3.bf16.msra.mxu1 %v6964_v52  ;;  %v494_v52 = vadd.f32 %v493_v48, %v307_v27 }
 0x148   : > { %6416 = vmatprep.subr.bf16.mxu1 %v6967_v55  ;;  %v7752_v55 = vld.sshfl [vmem:[#allocation2 + $0x12] sm:$0x11 pattern:$0x75316420] }
 0x149   : > { %6395 = vmatpush3.bf16.msra.mxu0 %v6966_v54  ;;  %v7010_v54 = vld [vmem:[%s7370_s8 + $0x338] sm:$0xff]  }
 0x14a   : > { %6396 = vmatprep.subr.bf16.mxu0 %v6969_v57  ;;  %v496_v57 = vadd.f32 %v495_v53, %v307_v27 }
 0x14b   : > { %6417 = vmatpush3.bf16.msra.mxu1 %v6968_v56  ;;  %v413_v56 = vadd.f32 %v412_v51, %v307_v27  ;;  %v738_v27 = vld [vmem:[#allocation2 + $0x2c] sm:$0x3] }
 0x14c   : > { %6418 = vmatprep.subr.bf16.mxu1 %v6971_v59  ;;  %v508_v59 = vmax.f32 %v494_v52, 0.0 }
 0x14d   : > { %6397 = vmatpush3.bf16.msra.mxu0 %v6970_v58  ;;  %v506_v58 = vmax.f32 %v411_v50, 0.0  ;;  %v7025_v50 = vld [vmem:[%s7370_s8 + $0x458] sm:$0xff]  }
 0x14e   : > { %6398 = vmatprep.subr.bf16.mxu0 %v6973_v61  ;;  %v509_v61 = vmax.f32 %v496_v57, 0.0 }
 0x14f   : > { %6419 = vmatpush3.bf16.msra.mxu1 %v6972_v60  ;;  %v507_v60 = vmax.f32 %v413_v56, 0.0  ;;  %v741_v56 = vld [vmem:[#allocation2 + $0x2e] sm:$0x3] }
 0x150   : > { %6420 = vmatprep.subr.bf16.mxu1 %v6975_v63  ;;  %v3064_v63 = vcombine.high %v7748_v34, %v7748_v34 }
 0x151   : > { %6399 = vmatpush3.bf16.msra.mxu0 %v6974_v62  ;;  %v7013_v62 = vld [vmem:[%s7370_s8 + $0x440] sm:$0xff]  }
 0x152   : > { %6400 = vmatprep.subr.bf16.mxu0 %v6977_v1  ;;  %v7014_v1 = vld [vmem:[%s7370_s8 + $0x400] sm:$0xff]  }
 0x153   : > { %6421 = vmatpush3.bf16.msra.mxu1 %v6976_v0  ;;  %v7012_v0 = vld [vmem:[%s7370_s8 + $0x3b8] sm:$0xff]  }
 0x154   : > { %6422 = vmatprep.subr.bf16.mxu1 %v6979_v2  ;;  %v5853_v2 = vpack.c.bf16 %v507_v60, %v506_v58 }
 0x155   : > { %6401 = vmatpush3.bf16.msra.mxu0 %v6978_v3  ;;  %v5868_v3 = vpack.c.bf16 %v509_v61, %v508_v59  ;;  %v7026_v61 = vld [vmem:[%s7370_s8 + $0x418] sm:$0xff]  }
 0x156   : > { %6430 = vmatprep.subr.bf16.mxu0 %v6981_v5  ;;  %v7015_v5 = vld [vmem:[%s7370_s8 + $0x4c0] sm:$0xff]  }
 0x157   : > { %6423 = vmatpush3.bf16.msra.mxu1 %v6980_v6  ;;  %v3225_v6 = vcombine.high %v7752_v55, %v7752_v55 }
 0x158   : > { %2566 = vmatmul.mubr.bf16.vlgmr.msra.gmra.mrb[16].mxu0 %v2427_v16  ;;  %6452 = vmatprep.subr.bf16.mxu1 %v6983_v11  ;;  %v575_v11 = vrot.slane %v5853_v2, %v7466_v10  ;;  %v7019_v16 = vld [vmem:[%s7370_s8 + $0x4c8] sm:$0xff]  }
 0x159   : > { %6431 = vmatpush3.bf16.msra.mxu0 %v6982_v8  ;;  %2887 = vmatprep.mubr.bf16.mxu0 %v2756_v17  ;;  %v7016_v8 = vld [vmem:[%s7370_s8 + $0x480] sm:$0xff]   ;;  %v7018_v17 = vld [vmem:[%s7370_s8 + $0x408] sm:$0xff]   ;;  %v3239_v4 = vrot.slane %v3225_v6, %v7466_v10  ;;  %v7028_v6 = vld [vmem:[%s7370_s8 + $0x498] sm:$0xff]  }
 0x15a   : > { %2727 = vmatmul.mubr.bf16.vlgmr.msra.gmra.mrb[16].mxu1 %v2588_v18  ;;  %6432 = vmatprep.subr.bf16.mxu0 %v6985_v15  ;;  %v3078_v15 = vrot.slane %v3064_v63, %v7466_v10  ;;  %v576_v18 = vcombine.high %v575_v11, %v575_v11 }
 0x15b   : > { %6453 = vmatpush3.bf16.msra.mxu1 %v6984_v12  ;;  %3048 = vmatprep.mubr.bf16.mxu1 %v2917_v21  ;;  %v809_v12 = vrot.slane %v5868_v3, %v7466_v10 }
 0x15c   : > { %6454 = vmatprep.subr.bf16.mxu1 %v6987_v20 }
 0x15d   : > { %6433 = vmatpush3.bf16.msra.mxu0 %v6986_v19  ;;  %v583_v19 = vrot.slane %v575_v11, %v7466_v10  ;;  %v810_v20 = vcombine.high %v809_v12, %v809_v12  ;;  %v7773_v21 = vrot.slane %v809_v12, %v7466_v10 }
 0x15e   : > { %6434 = vmatprep.subr.bf16.mxu0 %v6989_v22  ;;  %v2910_v22 = vrot.slane %v7708_v7, %v7466_v10  ;;  %v7023_v7 = vld [vmem:[%s7370_s8 + $0x4d0] sm:$0xff]  }
 0x15f   : > { %6455 = vmatpush3.bf16.msra.mxu1 %v6988_v23  ;;  %v7021_v23 = vld [vmem:[%s7370_s8 + $0x450] sm:$0xff]   ;;  %v844_v48 = vunpack.i.h.s16 %v7773_v21  ;;  %v5877_v11 = vpack.i.b16 %v7773_v21, %v7773_v21 }
 0x160   : > { %6456 = vmatprep.subr.bf16.mxu1 %v6991_v24  ;;  %v720_v24 = vld [vmem:[#allocation2 + $0x20] sm:$0x3] }
 0x161   : > { %6435 = vmatpush3.bf16.msra.mxu0 %v6990_v25  ;;  %v7020_v25 = vld [vmem:[%s7370_s8 + $0x488] sm:$0xff]  }
 0x162   : > { %6436 = vmatprep.subr.bf16.mxu0 %v6993_v26  ;;  %v590_v26 = vrot.slane %v576_v18, %v7466_v10 }
 0x163   : > { %6457 = vmatpush3.bf16.msra.mxu1 %v6992_v28  ;;  %v591_v28 = vcombine.high %v583_v19, %v583_v19 }
 0x164   : > { %6458 = vmatprep.subr.bf16.mxu1 %v6995_v31  ;;  %v610_v31 = vunpack.i.h.s16 %v583_v19 }
 0x165   : > { %6437 = vmatpush3.bf16.msra.mxu0 %v6994_v32  ;;  %v5862_v32 = vpack.i.b16 %v583_v19, %v583_v19 }
 0x166   : > { %6438 = vmatprep.subr.bf16.mxu0 %v6997_v35  ;;  %v726_v35 = vld [vmem:[#allocation2 + $0x24] sm:$0x3] }
 0x167   : > { %6459 = vmatpush3.bf16.msra.mxu1 %v6996_v33  ;;  %v723_v33 = vld [vmem:[#allocation2 + $0x22] sm:$0x3]  ;;  %v721_v47 = vsel %vm7480_vm11, %v5862_v32, %v720_v24 }
 0x168   : > { %6460 = vmatprep.subr.bf16.mxu1 %v6999_v37  ;;  %v732_v37 = vld [vmem:[#allocation2 + $0x28] sm:$0x3]  ;;  %722 = vst [vmem:[#allocation2 + $0x20] sm:$0x3] %v721_v47  ;;  %v7040_v47 = vld [vmem:[%s7370_s8 + $0x4b0] sm:$0xff]  }
 0x169   : > { %6439 = vmatpush3.bf16.msra.mxu0 %v6998_v36  ;;  %v729_v36 = vld [vmem:[#allocation2 + $0x26] sm:$0x3] }
 0x16a   : > { %6440 = vmatprep.subr.bf16.mxu0 %v7001_v38  ;;  %v7787_v38 = vcombine.high %v7773_v21, %v7773_v21 }
 0x16b   : > { %6461 = vmatpush3.bf16.msra.mxu1 %v7000_v30  ;;  %v7783_v30 = vrot.slane %v810_v20, %v7466_v10 }
 0x16c   : > { %6462 = vmatprep.subr.bf16.mxu1 %v7003_v40  ;;  %v592_v40 = vcombine.high %v590_v26, %v590_v26  ;;  %v5879_v29 = vpack.i.b16 %v7787_v38, %v7787_v38 }
 0x16d   : > { %6441 = vmatpush3.bf16.msra.mxu0 %v7002_v39  ;;  %v7022_v39 = vld [vmem:[%s7370_s8 + $0x410] sm:$0xff]   ;;  %v7803_v60 = vcombine.high %v7783_v30, %v7783_v30  ;;  %v846_v3 = vunpack.i.h.s16 %v7783_v30 }
 0x16e   : > { %6442 = vmatprep.subr.bf16.mxu0 %v7005_v42  ;;  %v614_v42 = vunpack.i.h.s16 %v591_v28  ;;  %v616_v51 = vunpack.i.h.s16 %v592_v40 }
 0x16f   : > { %6463 = vmatpush3.bf16.msra.mxu1 %v7004_v41  ;;  %v612_v41 = vunpack.i.h.s16 %v590_v26  ;;  %v850_v12 = vunpack.i.h.s16 %v7803_v60  ;;  %v870_v18 = vpack.i.b16 %v846_v3, %v846_v3  ;;  %v5880_v20 = vpack.i.b16 %v7803_v60, %v7803_v60  ;;  %v952_v21 = vld [vmem:[#allocation2 + $0x20] sm:$0x3]  ;;  %v7054_v3 = vld [vmem:[%s7370_s8 + $0x510] sm:$0xff]  }
 0x170   : > { %6464 = vmatprep.subr.bf16.mxu1 %v7007_v44  ;;  %v735_v44 = vld [vmem:[#allocation2 + $0x2a] sm:$0x3]  ;;  %v638_v53 = vpack.i.b16 %v614_v42, %v614_v42  ;;  %v640_v63 = vpack.i.b16 %v616_v51, %v616_v51  ;;  %v7037_v42 = vld [vmem:[%s7370_s8 + $0x470] sm:$0xff]  }
 0x171   : > { %6443 = vmatpush3.bf16.msra.mxu0 %v7006_v43  ;;  %v634_v43 = vpack.i.b16 %v610_v31, %v610_v31  ;;  %v636_v52 = vpack.i.b16 %v612_v41, %v612_v41  ;;  %v874_v24 = vpack.i.b16 %v850_v12, %v850_v12  ;;  %v7036_v41 = vld [vmem:[%s7370_s8 + $0x4a8] sm:$0xff]   ;;  %v7861_v51 = vld.sshfl [vmem:[#allocation2 + $0x16] sm:$0x11 pattern:$0x75316420]  ;;  %v7060_v12 = vld [vmem:[%s7370_s8 + $0x598] sm:$0xff]  }
 0x172   : > { %6444 = vmatprep.subr.bf16.mxu0 %v7009_v46  ;;  %v5864_v46 = vpack.i.b16 %v591_v28, %v591_v28 }
 0x173   : > { %6465 = vmatpush3.bf16.msra.mxu1 %v7008_v45  ;;  %v5863_v45 = vpack.i.b16 %v590_v26, %v590_v26  ;;  %v724_v57 = vsel %vm7480_vm11, %v634_v43, %v723_v33 }
 0x174   : > { %6466 = vmatprep.subr.bf16.mxu1 %v7011_v49  ;;  %v7024_v49 = vld [vmem:[%s7370_s8 + $0x490] sm:$0xff]   ;;  %v733_v59 = vsel %vm7480_vm11, %v5864_v46, %v732_v37  ;;  %725 = vst [vmem:[#allocation2 + $0x22] sm:$0x3] %v724_v57  ;;  %v7034_v37 = vld [vmem:[%s7370_s8 + $0x428] sm:$0xff]   ;;  %v7041_v46 = vld [vmem:[%s7370_s8 + $0x478] sm:$0xff]   ;;  %v3547_v57 = vcombine.high %v7861_v51, %v7861_v51 }
 0x175   : > { %6445 = vmatpush3.bf16.msra.mxu0 %v7010_v54  ;;  %v5865_v54 = vpack.i.b16 %v592_v40, %v592_v40  ;;  %v727_v58 = vsel %vm7480_vm11, %v5863_v45, %v726_v35  ;;  %734 = vst [vmem:[#allocation2 + $0x28] sm:$0x3] %v733_v59  ;;  %v7038_v45 = vld [vmem:[%s7370_s8 + $0x430] sm:$0xff]   ;;  %v7049_v59 = vld [vmem:[%s7370_s8 + $0x548] sm:$0xff]  }
 0x176   : > { %6474 = vmatprep.subr.bf16.mxu0 %v7013_v62  ;;  %v7027_v62 = vld [vmem:[%s7370_s8 + $0x4d8] sm:$0xff]   ;;  %728 = vst [vmem:[#allocation2 + $0x24] sm:$0x3] %v727_v58  ;;  %v3071_v58 = vrot.slane %v7748_v34, %v7466_v10  ;;  %v3561_v34 = vrot.slane %v3547_v57, %v7466_v10  ;;  %v7099_v57 = vld [vmem:[%s7370_s8 + $0x6e8] sm:$0xff]  }
 0x177   : > { %6467 = vmatpush3.bf16.msra.mxu1 %v7012_v0  ;;  %v730_v0 = vsel %vm7480_vm11, %v636_v52, %v729_v36  ;;  %v739_v2 = vsel %vm7480_vm11, %v5865_v54, %v738_v27  ;;  %v7039_v27 = vld [vmem:[%s7370_s8 + $0x4f0] sm:$0xff]   ;;  %v7044_v52 = vld [vmem:[%s7370_s8 + $0x4b8] sm:$0xff]   ;;  %v7047_v54 = vld [vmem:[%s7370_s8 + $0x5c0] sm:$0xff]  }
 0x178   : > { %2888 = vmatmul.mubr.bf16.vlgmr.msra.gmra.mrb[20].mxu0 %v2749_v14  ;;  %6496 = vmatprep.subr.bf16.mxu1 %v7015_v5  ;;  %731 = vst [vmem:[#allocation2 + $0x26] sm:$0x3] %v730_v0  ;;  %740 = vst [vmem:[#allocation2 + $0x2c] sm:$0x3] %v739_v2  ;;  %v848_v5 = vunpack.i.h.s16 %v7787_v38  ;;  %v7030_v14 = vld [vmem:[%s7370_s8 + $0x420] sm:$0xff]   ;;  %v7051_v0 = vld [vmem:[%s7370_s8 + $0x5c8] sm:$0xff]  }
 0x179   : > { %6475 = vmatpush3.bf16.msra.mxu0 %v7014_v1  ;;  %3209 = vmatprep.mubr.bf16.mxu0 %v3078_v15  ;;  %v736_v1 = vsel %vm7480_vm11, %v638_v53, %v735_v44  ;;  %v7031_v15 = vld [vmem:[%s7370_s8 + $0x4e0] sm:$0xff]   ;;  %v7052_v2 = vld [vmem:[%s7370_s8 + $0x588] sm:$0xff]  }
 0x17a   : > { %3049 = vmatmul.mubr.bf16.vlgmr.msra.gmra.mrb[20].mxu1 %v2910_v22  ;;  %6476 = vmatprep.subr.bf16.mxu0 %v7017_v9  ;;  %737 = vst [vmem:[#allocation2 + $0x2a] sm:$0x3] %v736_v1  ;;  %v742_v9 = vsel %vm7480_vm11, %v640_v63, %v741_v56  ;;  %v872_v19 = vpack.i.b16 %v848_v5, %v848_v5  ;;  %v7032_v22 = vld [vmem:[%s7370_s8 + $0x4a0] sm:$0xff]   ;;  %v7050_v63 = vld [vmem:[%s7370_s8 + $0x508] sm:$0xff]   ;;  %v7053_v1 = vld [vmem:[%s7370_s8 + $0x550] sm:$0xff]  }
 0x17b   : > { %6497 = vmatpush3.bf16.msra.mxu1 %v7016_v8  ;;  %3370 = vmatprep.mubr.bf16.mxu1 %v3239_v4  ;;  %v7029_v8 = vld [vmem:[%s7370_s8 + $0x460] sm:$0xff]   ;;  %743 = vst [vmem:[#allocation2 + $0x2e] sm:$0x3] %v742_v9  ;;  %v7033_v4 = vld [vmem:[%s7370_s8 + $0x468] sm:$0xff]   ;;  %v7057_v5 = vld [vmem:[%s7370_s8 + $0x558] sm:$0xff]  }
 0x17c   : > { %6498 = vmatprep.subr.bf16.mxu1 %v7019_v16  ;;  %v868_v16 = vpack.i.b16 %v844_v48, %v844_v48  ;;  %v964_v28 = vld [vmem:[#allocation2 + $0x28] sm:$0x3]  ;;  %v7043_v48 = vld [vmem:[%s7370_s8 + $0x4f8] sm:$0xff]   ;;  %v7046_v56 = vld [vmem:[%s7370_s8 + $0x500] sm:$0xff]  }
 0x17d   : > { %6477 = vmatpush3.bf16.msra.mxu0 %v7018_v17  ;;  %v5878_v17 = vpack.i.b16 %v7783_v30, %v7783_v30  ;;  %v958_v26 = vld [vmem:[#allocation2 + $0x24] sm:$0x3]  ;;  %v965_v35 = vsel %vm7535_vm15, %v5879_v29, %v964_v28  ;;  %v7035_v30 = vld [vmem:[%s7370_s8 + $0x4e8] sm:$0xff]   ;;  %v7058_v9 = vld [vmem:[%s7370_s8 + $0x518] sm:$0xff]  }
 0x17e   : > { %6478 = vmatprep.subr.bf16.mxu0 %v7021_v23  ;;  %v953_v23 = vsel %vm7535_vm15, %v5877_v11, %v952_v21  ;;  %966 = vst [vmem:[#allocation2 + $0x28] sm:$0x3] %v965_v35  ;;  %v7061_v11 = vld [vmem:[%s7370_s8 + $0x560] sm:$0xff]   ;;  %v7067_v29 = vld [vmem:[%s7370_s8 + $0x5e8] sm:$0xff]   ;;  %v7071_v21 = vld [vmem:[%s7370_s8 + $0x5f0] sm:$0xff]  }
 0x17f   : > { %6499 = vmatpush3.bf16.msra.mxu1 %v7020_v25  ;;  %954 = vst [vmem:[#allocation2 + $0x20] sm:$0x3] %v953_v23  ;;  %v955_v25 = vld [vmem:[#allocation2 + $0x22] sm:$0x3]  ;;  %v959_v32 = vsel %vm7535_vm15, %v5878_v17, %v958_v26  ;;  %v961_v33 = vld [vmem:[#allocation2 + $0x26] sm:$0x3] }
 0x180   : > { %6500 = vmatprep.subr.bf16.mxu1 %v7023_v7  ;;  %v956_v31 = vsel %vm7535_vm15, %v868_v16, %v955_v25  ;;  %v970_v36 = vld [vmem:[#allocation2 + $0x2c] sm:$0x3]  ;;  %960 = vst [vmem:[#allocation2 + $0x24] sm:$0x3] %v959_v32  ;;  %v962_v38 = vsel %vm7535_vm15, %v870_v18, %v961_v33  ;;  %v7064_v17 = vld [vmem:[%s7370_s8 + $0x5a0] sm:$0xff]   ;;  %v7072_v23 = vld [vmem:[%s7370_s8 + $0x5b0] sm:$0xff]  }
 0x181   : > { %6479 = vmatpush3.bf16.msra.mxu0 %v7022_v39  ;;  %v967_v7 = vld [vmem:[#allocation2 + $0x2a] sm:$0x3]  ;;  %957 = vst [vmem:[#allocation2 + $0x22] sm:$0x3] %v956_v31  ;;  %v971_v40 = vsel %vm7535_vm15, %v5880_v20, %v970_v36  ;;  %963 = vst [vmem:[#allocation2 + $0x26] sm:$0x3] %v962_v38 }
 0x182   : > { %6480 = vmatprep.subr.bf16.mxu0 %v7025_v50  ;;  %v968_v39 = vsel %vm7535_vm15, %v872_v19, %v967_v7  ;;  %972 = vst [vmem:[#allocation2 + $0x2c] sm:$0x3] %v971_v40  ;;  %v973_v43 = vld [vmem:[#allocation2 + $0x2e] sm:$0x3]  ;;  %v7045_v50 = vld [vmem:[%s7370_s8 + $0x540] sm:$0xff]   ;;  %v7069_v19 = vld [vmem:[%s7370_s8 + $0x570] sm:$0xff]   ;;  %v3554_v40 = vrot.slane %v7861_v51, %v7466_v10 }
 0x183   : > { %6501 = vmatpush3.bf16.msra.mxu1 %v7024_v49  ;;  %969 = vst [vmem:[#allocation2 + $0x2a] sm:$0x3] %v968_v39  ;;  %v974_v44 = vsel %vm7535_vm15, %v874_v24, %v973_v43  ;;  %v7857_v49 = vld.sshfl [vmem:[#allocation2 + $0x14] sm:$0x11 pattern:$0x75316420] }
 0x184   : > { %6502 = vmatprep.subr.bf16.mxu1 %v7027_v62  ;;  %975 = vst [vmem:[#allocation2 + $0x2e] sm:$0x3] %v974_v44  ;;  %v3386_v53 = vcombine.high %v7857_v49, %v7857_v49  ;;  %v3232_v62 = vrot.slane %v7752_v55, %v7466_v10  ;;  %v7055_v55 = vld [vmem:[%s7370_s8 + $0x5d0] sm:$0xff]   ;;  %v7065_v16 = vld [vmem:[%s7370_s8 + $0x568] sm:$0xff]   ;;  %v7075_v24 = vld [vmem:[%s7370_s8 + $0x5f8] sm:$0xff]  }
 0x185   : > { %6481 = vmatpush3.bf16.msra.mxu0 %v7026_v61  ;;  %v7048_v61 = vld [vmem:[%s7370_s8 + $0x580] sm:$0xff]   ;;  %v7066_v18 = vld [vmem:[%s7370_s8 + $0x528] sm:$0xff]   ;;  %v7903_v25 = vld.sshfl [vmem:[#allocation2 + $0x18] sm:$0x11 pattern:$0x75316420] }
 0x186   : > { %6482 = vmatprep.subr.bf16.mxu0 %v7029_v8  ;;  %v3400_v60 = vrot.slane %v3386_v53, %v7466_v10  ;;  %v7059_v8 = vld [vmem:[%s7370_s8 + $0x5d8] sm:$0xff]   ;;  %v7068_v20 = vld [vmem:[%s7370_s8 + $0x5a8] sm:$0xff]   ;;  %v7077_v28 = vld [vmem:[%s7370_s8 + $0x640] sm:$0xff]   ;;  %v3708_v33 = vcombine.high %v7903_v25, %v7903_v25 }
 0x187   : > { %6503 = vmatpush3.bf16.msra.mxu1 %v7028_v6  ;;  %v7056_v6 = vld [vmem:[%s7370_s8 + $0x590] sm:$0xff]   ;;  %v7074_v26 = vld [vmem:[%s7370_s8 + $0x538] sm:$0xff]   ;;  %v7079_v35 = vld [vmem:[%s7370_s8 + $0x6c0] sm:$0xff]  }
 0x188   : > { %6504 = vmatprep.subr.bf16.mxu1 %v7031_v15  ;;  %v7062_v15 = vld [vmem:[%s7370_s8 + $0x520] sm:$0xff]   ;;  %v7907_v31 = vld.sshfl [vmem:[#allocation2 + $0x1a] sm:$0x11 pattern:$0x75316420]  ;;  %v3722_v38 = vrot.slane %v3708_v33, %v7466_v10  ;;  %v7082_v43 = vld [vmem:[%s7370_s8 + $0x608] sm:$0xff]  }
 0x189   : > { %6483 = vmatpush3.bf16.msra.mxu0 %v7030_v14  ;;  %v7063_v14 = vld [vmem:[%s7370_s8 + $0x5e0] sm:$0xff]   ;;  %v7076_v32 = vld [vmem:[%s7370_s8 + $0x5b8] sm:$0xff]   ;;  %v3869_v36 = vcombine.high %v7907_v31, %v7907_v31  ;;  %v7085_v44 = vld [vmem:[%s7370_s8 + $0x650] sm:$0xff]  }
 0x18a   : > { %6484 = vmatprep.subr.bf16.mxu0 %v7033_v4  ;;  %v7073_v4 = vld [vmem:[%s7370_s8 + $0x578] sm:$0xff]   ;;  %v7078_v7 = vld [vmem:[%s7370_s8 + $0x600] sm:$0xff]  }
 0x18b   : > { %6505 = vmatpush3.bf16.msra.mxu1 %v7032_v22  ;;  %v7070_v22 = vld [vmem:[%s7370_s8 + $0x530] sm:$0xff]   ;;  %v7080_v39 = vld [vmem:[%s7370_s8 + $0x680] sm:$0xff]   ;;  %v7092_v51 = vld [vmem:[%s7370_s8 + $0x698] sm:$0xff]  }
 0x18c   : > { %6506 = vmatprep.subr.bf16.mxu1 %v7035_v30  ;;  %v7081_v30 = vld [vmem:[%s7370_s8 + $0x648] sm:$0xff]   ;;  %v7094_v53 = vld [vmem:[%s7370_s8 + $0x620] sm:$0xff]  }
 0x18d   : > { %6485 = vmatpush3.bf16.msra.mxu0 %v7034_v37  ;;  %v3393_v37 = vrot.slane %v7857_v49, %v7466_v10  ;;  %v7091_v49 = vld [vmem:[%s7370_s8 + $0x6d8] sm:$0xff]   ;;  %v7126_v33 = vld [vmem:[%s7370_s8 + $0x720] sm:$0xff]  }
 0x18e   : > { %6486 = vmatprep.subr.bf16.mxu0 %v7037_v42  ;;  %v3883_v42 = vrot.slane %v3869_v36, %v7466_v10  ;;  %v7131_v36 = vld [vmem:[%s7370_s8 + $0x7e8] sm:$0xff]  }
 0x18f   : > { %6507 = vmatpush3.bf16.msra.mxu1 %v7036_v41  ;;  %v7083_v41 = vld [vmem:[%s7370_s8 + $0x6c8] sm:$0xff]  }
 0x190   : > { %6508 = vmatprep.subr.bf16.mxu1 %v7039_v27  ;;  %v7084_v27 = vld [vmem:[%s7370_s8 + $0x688] sm:$0xff]  }
 0x191   : > { %6487 = vmatpush3.bf16.msra.mxu0 %v7038_v45  ;;  %v7087_v45 = vld [vmem:[%s7370_s8 + $0x6d0] sm:$0xff]  }
 0x192   : > { %6488 = vmatprep.subr.bf16.mxu0 %v7041_v46  ;;  %v7086_v46 = vld [vmem:[%s7370_s8 + $0x610] sm:$0xff]  }
 0x193   : > { %6509 = vmatpush3.bf16.msra.mxu1 %v7040_v47  ;;  %v7089_v47 = vld [vmem:[%s7370_s8 + $0x658] sm:$0xff]  }
 0x194   : > { %6510 = vmatprep.subr.bf16.mxu1 %v7043_v48  ;;  %v7088_v48 = vld [vmem:[%s7370_s8 + $0x690] sm:$0xff]  }
 0x195   : > { %6489 = vmatpush3.bf16.msra.mxu0 %v7042_v13  ;;  %v7090_v13 = vld [vmem:[%s7370_s8 + $0x618] sm:$0xff]  }
 0x196   : > { %6518 = vmatprep.subr.bf16.mxu0 %v7045_v50  ;;  %v7093_v50 = vld [vmem:[%s7370_s8 + $0x660] sm:$0xff]  }
 0x197   : > { %6511 = vmatpush3.bf16.msra.mxu1 %v7044_v52  ;;  %v7095_v52 = vld [vmem:[%s7370_s8 + $0x6e0] sm:$0xff]  }
 0x198   : > { %3210 = vmatmul.mubr.bf16.vlgmr.msra.gmra.mrb[24].mxu0 %v3071_v58  ;;  %6540 = vmatprep.subr.bf16.mxu1 %v7047_v54  ;;  %v7097_v54 = vld [vmem:[%s7370_s8 + $0x668] sm:$0xff]  }
 0x199   : > { %6519 = vmatpush3.bf16.msra.mxu0 %v7046_v56  ;;  %3531 = vmatprep.mubr.bf16.mxu0 %v3400_v60  ;;  %v7096_v56 = vld [vmem:[%s7370_s8 + $0x6a0] sm:$0xff]   ;;  %v7098_v58 = vld [vmem:[%s7370_s8 + $0x628] sm:$0xff]  }
 0x19a   : > { %3371 = vmatmul.mubr.bf16.vlgmr.msra.gmra.mrb[24].mxu1 %v3232_v62  ;;  %6520 = vmatprep.subr.bf16.mxu0 %v7049_v59  ;;  %v7101_v59 = vld [vmem:[%s7370_s8 + $0x670] sm:$0xff]   ;;  %v7100_v60 = vld [vmem:[%s7370_s8 + $0x6a8] sm:$0xff]  }
 0x19b   : > { %6541 = vmatpush3.bf16.msra.mxu1 %v7048_v61  ;;  %3692 = vmatprep.mubr.bf16.mxu1 %v3561_v34  ;;  %v7103_v61 = vld [vmem:[%s7370_s8 + $0x6f0] sm:$0xff]   ;;  %v7107_v34 = vld [vmem:[%s7370_s8 + $0x6f8] sm:$0xff]  }
 0x19c   : > { %6542 = vmatprep.subr.bf16.mxu1 %v7051_v0  ;;  %v7102_v62 = vld [vmem:[%s7370_s8 + $0x630] sm:$0xff]  }
 0x19d   : > { %6521 = vmatpush3.bf16.msra.mxu0 %v7050_v63  ;;  %v7105_v63 = vld [vmem:[%s7370_s8 + $0x678] sm:$0xff]   ;;  %v7104_v0 = vld [vmem:[%s7370_s8 + $0x6b0] sm:$0xff]  }
 0x19e   : > { %6522 = vmatprep.subr.bf16.mxu0 %v7053_v1  ;;  %v7949_v1 = vld.sshfl [vmem:[#allocation2 + $0x1c] sm:$0x11 pattern:$0x75316420] }
 0x19f   : > { %6543 = vmatpush3.bf16.msra.mxu1 %v7052_v2  ;;  %v7106_v2 = vld [vmem:[%s7370_s8 + $0x638] sm:$0xff]  }
 0x1a0   : > { %6544 = vmatprep.subr.bf16.mxu1 %v7055_v55  ;;  %v7109_v55 = vld [vmem:[%s7370_s8 + $0x740] sm:$0xff]  }
 0x1a1   : > { %6523 = vmatpush3.bf16.msra.mxu0 %v7054_v3  ;;  %v7953_v3 = vld.sshfl [vmem:[#allocation2 + $0x1e] sm:$0x11 pattern:$0x75316420] }
 0x1a2   : > { %6524 = vmatprep.subr.bf16.mxu0 %v7057_v5  ;;  %v7108_v5 = vld [vmem:[%s7370_s8 + $0x6b8] sm:$0xff]  }
 0x1a3   : > { %6545 = vmatpush3.bf16.msra.mxu1 %v7056_v6  ;;  %v4030_v6 = vcombine.high %v7949_v1, %v7949_v1 }
 0x1a4   : > { %6546 = vmatprep.subr.bf16.mxu1 %v7059_v8  ;;  %v7111_v8 = vld [vmem:[%s7370_s8 + $0x7c0] sm:$0xff]  }
 0x1a5   : > { %6525 = vmatpush3.bf16.msra.mxu0 %v7058_v9  ;;  %v7110_v9 = vld [vmem:[%s7370_s8 + $0x700] sm:$0xff]  }
 0x1a6   : > { %6526 = vmatprep.subr.bf16.mxu0 %v7061_v11  ;;  %v4191_v11 = vcombine.high %v7953_v3, %v7953_v3 }
 0x1a7   : > { %6547 = vmatpush3.bf16.msra.mxu1 %v7060_v12  ;;  %v3715_v12 = vrot.slane %v7903_v25, %v7466_v10  ;;  %v7123_v25 = vld [vmem:[%s7370_s8 + $0x7d8] sm:$0xff]  }
 0x1a8   : > { %6548 = vmatprep.subr.bf16.mxu1 %v7063_v14  ;;  %v7113_v14 = vld [vmem:[%s7370_s8 + $0x748] sm:$0xff]  }
 0x1a9   : > { %6527 = vmatpush3.bf16.msra.mxu0 %v7062_v15  ;;  %v4044_v15 = vrot.slane %v4030_v6, %v7466_v10 }
 0x1aa   : > { %6528 = vmatprep.subr.bf16.mxu0 %v7065_v16  ;;  %v7112_v16 = vld [vmem:[%s7370_s8 + $0x780] sm:$0xff]  }
 0x1ab   : > { %6549 = vmatpush3.bf16.msra.mxu1 %v7064_v17  ;;  %v3876_v17 = vrot.slane %v7907_v31, %v7466_v10  ;;  %v7124_v31 = vld [vmem:[%s7370_s8 + $0x798] sm:$0xff]  }
 0x1ac   : > { %6550 = vmatprep.subr.bf16.mxu1 %v7067_v29  ;;  %v7115_v29 = vld [vmem:[%s7370_s8 + $0x7c8] sm:$0xff]  }
 0x1ad   : > { %6529 = vmatpush3.bf16.msra.mxu0 %v7066_v18  ;;  %v4205_v18 = vrot.slane %v4191_v11, %v7466_v10  ;;  %v7146_v11 = vld [vmem:[%s7370_s8 + $0x808] sm:$0xff]  }
 0x1ae   : > { %6530 = vmatprep.subr.bf16.mxu0 %v7069_v19  ;;  %v7114_v19 = vld [vmem:[%s7370_s8 + $0x708] sm:$0xff]  }
 0x1af   : > { %6551 = vmatpush3.bf16.msra.mxu1 %v7068_v20  ;;  %v7117_v20 = vld [vmem:[%s7370_s8 + $0x750] sm:$0xff]  }
 0x1b0   : > { %6552 = vmatprep.subr.bf16.mxu1 %v7071_v21  ;;  %v7116_v21 = vld [vmem:[%s7370_s8 + $0x788] sm:$0xff]  }
 0x1b1   : > { %6531 = vmatpush3.bf16.msra.mxu0 %v7070_v22  ;;  %v7119_v22 = vld [vmem:[%s7370_s8 + $0x7d0] sm:$0xff]  }
 0x1b2   : > { %6532 = vmatprep.subr.bf16.mxu0 %v7073_v4  ;;  %v7118_v4 = vld [vmem:[%s7370_s8 + $0x710] sm:$0xff]  }
 0x1b3   : > { %6553 = vmatpush3.bf16.msra.mxu1 %v7072_v23  ;;  %v7121_v23 = vld [vmem:[%s7370_s8 + $0x758] sm:$0xff]  }
 0x1b4   : > { %6554 = vmatprep.subr.bf16.mxu1 %v7075_v24  ;;  %v7120_v24 = vld [vmem:[%s7370_s8 + $0x790] sm:$0xff]  }
 0x1b5   : > { %6533 = vmatpush3.bf16.msra.mxu0 %v7074_v26  ;;  %v7122_v26 = vld [vmem:[%s7370_s8 + $0x718] sm:$0xff]  }
 0x1b6   : > { %6562 = vmatprep.subr.bf16.mxu0 %v7077_v28  ;;  %v7125_v28 = vld [vmem:[%s7370_s8 + $0x760] sm:$0xff]  }
 0x1b7   : > { %6555 = vmatpush3.bf16.msra.mxu1 %v7076_v32  ;;  %v7127_v32 = vld [vmem:[%s7370_s8 + $0x7e0] sm:$0xff]  }
 0x1b8   : > { %3532 = vmatmul.mubr.bf16.vlgmr.msra.gmra.mrb[28].mxu0 %v3393_v37  ;;  %6584 = vmatprep.subr.bf16.mxu1 %v7079_v35  ;;  %v7129_v35 = vld [vmem:[%s7370_s8 + $0x768] sm:$0xff]  }
 0x1b9   : > { %6563 = vmatpush3.bf16.msra.mxu0 %v7078_v7  ;;  %3853 = vmatprep.mubr.bf16.mxu0 %v3722_v38  ;;  %v7128_v7 = vld [vmem:[%s7370_s8 + $0x7a0] sm:$0xff]   ;;  %v7130_v37 = vld [vmem:[%s7370_s8 + $0x728] sm:$0xff]  }
 0x1ba   : > { %3693 = vmatmul.mubr.bf16.vlgmr.msra.gmra.mrb[28].mxu1 %v3554_v40  ;;  %6564 = vmatprep.subr.bf16.mxu0 %v7081_v30  ;;  %v7133_v30 = vld [vmem:[%s7370_s8 + $0x770] sm:$0xff]  }
 0x1bb   : > { %6585 = vmatpush3.bf16.msra.mxu1 %v7080_v39  ;;  %4014 = vmatprep.mubr.bf16.mxu1 %v3883_v42  ;;  %v7132_v39 = vld [vmem:[%s7370_s8 + $0x7a8] sm:$0xff]  }
 0x1bc   : > { %6586 = vmatprep.subr.bf16.mxu1 %v7083_v41  ;;  %v7135_v41 = vld [vmem:[%s7370_s8 + $0x7f0] sm:$0xff]  }
 0x1bd   : > { %6565 = vmatpush3.bf16.msra.mxu0 %v7082_v43 }
 0x1be   : > { %6566 = vmatprep.subr.bf16.mxu0 %v7085_v44 }
 0x1bf   : > { %6587 = vmatpush3.bf16.msra.mxu1 %v7084_v27  ;;  %v7134_v27 = vld [vmem:[%s7370_s8 + $0x730] sm:$0xff]  }
 0x1c0   : > { %6588 = vmatprep.subr.bf16.mxu1 %v7087_v45  ;;  %v7137_v45 = vld [vmem:[%s7370_s8 + $0x778] sm:$0xff]  }
 0x1c1   : > { %6567 = vmatpush3.bf16.msra.mxu0 %v7086_v46 }
 0x1c2   : > { %6568 = vmatprep.subr.bf16.mxu0 %v7089_v47 }
 0x1c3   : > { %6589 = vmatpush3.bf16.msra.mxu1 %v7088_v48  ;;  %v7993_v48 = vld.sshfl [vmem:[#allocation2 + $0x20] sm:$0x11 pattern:$0x75316420] }
 0x1c4   : > { %6590 = vmatprep.subr.bf16.mxu1 %v7091_v49 }
 0x1c5   : > { %6569 = vmatpush3.bf16.msra.mxu0 %v7090_v13 }
 0x1c6   : > { %6570 = vmatprep.subr.bf16.mxu0 %v7093_v50  ;;  %v7136_v50 = vld [vmem:[%s7370_s8 + $0x7b0] sm:$0xff]  }
 0x1c7   : > { %6591 = vmatpush3.bf16.msra.mxu1 %v7092_v51 }
 0x1c8   : > { %6592 = vmatprep.subr.bf16.mxu1 %v7095_v52  ;;  %v7139_v52 = vld [vmem:[%s7370_s8 + $0x7f8] sm:$0xff]  }
 0x1c9   : > { %6571 = vmatpush3.bf16.msra.mxu0 %v7094_v53  ;;  %v7997_v53 = vld.sshfl [vmem:[#allocation2 + $0x22] sm:$0x11 pattern:$0x75316420] }
 0x1ca   : > { %6572 = vmatprep.subr.bf16.mxu0 %v7097_v54 }
 0x1cb   : > { %6593 = vmatpush3.bf16.msra.mxu1 %v7096_v56 }
 0x1cc   : > { %6594 = vmatprep.subr.bf16.mxu1 %v7099_v57  ;;  %v7138_v57 = vld [vmem:[%s7370_s8 + $0x738] sm:$0xff]  }
 0x1cd   : > { %6573 = vmatpush3.bf16.msra.mxu0 %v7098_v58  ;;  %v4352_v58 = vcombine.high %v7993_v48, %v7993_v48 }
 0x1ce   : > { %6574 = vmatprep.subr.bf16.mxu0 %v7101_v59 }
 0x1cf   : > { %6595 = vmatpush3.bf16.msra.mxu1 %v7100_v60  ;;  %v7141_v60 = vld [vmem:[%s7370_s8 + $0x840] sm:$0xff]  }
 0x1d0   : > { %6596 = vmatprep.subr.bf16.mxu1 %v7103_v61  ;;  %v7140_v61 = vld [vmem:[%s7370_s8 + $0x7b8] sm:$0xff]  }
 0x1d1   : > { %6575 = vmatpush3.bf16.msra.mxu0 %v7102_v62  ;;  %v4513_v62 = vcombine.high %v7997_v53, %v7997_v53 }
 0x1d2   : > { %6576 = vmatprep.subr.bf16.mxu0 %v7105_v63  ;;  %v7143_v63 = vld [vmem:[%s7370_s8 + $0x8c0] sm:$0xff]  }
 0x1d3   : > { %6597 = vmatpush3.bf16.msra.mxu1 %v7104_v0  ;;  %v7142_v0 = vld [vmem:[%s7370_s8 + $0x800] sm:$0xff]   ;;  %v4527_v6 = vrot.slane %v4513_v62, %v7466_v10  ;;  %v4520_v62 = vrot.slane %v7997_v53, %v7466_v10  ;;  %v7183_v53 = vld [vmem:[%s7370_s8 + $0x9d0] sm:$0xff]  }
 0x1d4   : > { %6598 = vmatprep.subr.bf16.mxu1 %v7107_v34  ;;  %v4366_v34 = vrot.slane %v4352_v58, %v7466_v10  ;;  %v4359_v58 = vrot.slane %v7993_v48, %v7466_v10 }
 0x1d5   : > { %6577 = vmatpush3.bf16.msra.mxu0 %v7106_v2  ;;  %v4037_v2 = vrot.slane %v7949_v1, %v7466_v10  ;;  %v7149_v1 = vld [vmem:[%s7370_s8 + $0x850] sm:$0xff]  }
 0x1d6   : > { %6606 = vmatprep.subr.bf16.mxu0 %v7109_v55  ;;  %v7145_v55 = vld [vmem:[%s7370_s8 + $0x848] sm:$0xff]  }
 0x1d7   : > { %6599 = vmatpush3.bf16.msra.mxu1 %v7108_v5  ;;  %v7144_v5 = vld [vmem:[%s7370_s8 + $0x880] sm:$0xff]  }
 0x1d8   : > { %3854 = vmatmul.mubr.bf16.vlgmr.msra.gmra.mrb[32].mxu0 %v3715_v12  ;;  %6628 = vmatprep.subr.bf16.mxu1 %v7111_v8  ;;  %v4198_v8 = vrot.slane %v7953_v3, %v7466_v10  ;;  %v7148_v12 = vld [vmem:[%s7370_s8 + $0x888] sm:$0xff]   ;;  %v7150_v3 = vld [vmem:[%s7370_s8 + $0x810] sm:$0xff]  }
 0x1d9   : > { %6607 = vmatpush3.bf16.msra.mxu0 %v7110_v9  ;;  %4175 = vmatprep.mubr.bf16.mxu0 %v4044_v15  ;;  %v7147_v9 = vld [vmem:[%s7370_s8 + $0x8c8] sm:$0xff]   ;;  %v7153_v15 = vld [vmem:[%s7370_s8 + $0x858] sm:$0xff]  }
 0x1da   : > { %4015 = vmatmul.mubr.bf16.vlgmr.msra.gmra.mrb[32].mxu1 %v3876_v17  ;;  %6608 = vmatprep.subr.bf16.mxu0 %v7113_v14  ;;  %v7151_v14 = vld [vmem:[%s7370_s8 + $0x8d0] sm:$0xff]   ;;  %v7155_v17 = vld [vmem:[%s7370_s8 + $0x8d8] sm:$0xff]  }
 0x1db   : > { %6629 = vmatpush3.bf16.msra.mxu1 %v7112_v16  ;;  %4336 = vmatprep.mubr.bf16.mxu1 %v4205_v18  ;;  %v7152_v16 = vld [vmem:[%s7370_s8 + $0x890] sm:$0xff]   ;;  %v7157_v18 = vld [vmem:[%s7370_s8 + $0x860] sm:$0xff]  }
 0x1dc   : > { %6630 = vmatprep.subr.bf16.mxu1 %v7115_v29  ;;  %v7154_v29 = vld [vmem:[%s7370_s8 + $0x818] sm:$0xff]  }
 0x1dd   : > { %6609 = vmatpush3.bf16.msra.mxu0 %v7114_v19  ;;  %v7156_v19 = vld [vmem:[%s7370_s8 + $0x898] sm:$0xff]  }
 0x1de   : > { %6610 = vmatprep.subr.bf16.mxu0 %v7117_v20  ;;  %v7159_v20 = vld [vmem:[%s7370_s8 + $0x8e0] sm:$0xff]  }
 0x1df   : > { %6631 = vmatpush3.bf16.msra.mxu1 %v7116_v21  ;;  %v7158_v21 = vld [vmem:[%s7370_s8 + $0x820] sm:$0xff]  }
 0x1e0   : > { %6632 = vmatprep.subr.bf16.mxu1 %v7119_v22  ;;  %v7161_v22 = vld [vmem:[%s7370_s8 + $0x868] sm:$0xff]  }
 0x1e1   : > { %6611 = vmatpush3.bf16.msra.mxu0 %v7118_v4  ;;  %v7160_v4 = vld [vmem:[%s7370_s8 + $0x8a0] sm:$0xff]  }
 0x1e2   : > { %6612 = vmatprep.subr.bf16.mxu0 %v7121_v23  ;;  %v7163_v23 = vld [vmem:[%s7370_s8 + $0x8e8] sm:$0xff]  }
 0x1e3   : > { %6633 = vmatpush3.bf16.msra.mxu1 %v7120_v24  ;;  %v7162_v24 = vld [vmem:[%s7370_s8 + $0x828] sm:$0xff]  }
 0x1e4   : > { %6634 = vmatprep.subr.bf16.mxu1 %v7123_v25  ;;  %v7165_v25 = vld [vmem:[%s7370_s8 + $0x870] sm:$0xff]  }
 0x1e5   : > { %6613 = vmatpush3.bf16.msra.mxu0 %v7122_v26 }
 0x1e6   : > { %6614 = vmatprep.subr.bf16.mxu0 %v7125_v28  ;;  %v7164_v28 = vld [vmem:[%s7370_s8 + $0x8a8] sm:$0xff]  }
 0x1e7   : > { %6635 = vmatpush3.bf16.msra.mxu1 %v7124_v31 }
 0x1e8   : > { %6636 = vmatprep.subr.bf16.mxu1 %v7127_v32  ;;  %v7167_v32 = vld [vmem:[%s7370_s8 + $0x8f0] sm:$0xff]  }
 0x1e9   : > { %6615 = vmatpush3.bf16.msra.mxu0 %v7126_v33 }
 0x1ea   : > { %6616 = vmatprep.subr.bf16.mxu0 %v7129_v35  ;;  %v6314_v38 = vpop.f32.mrb[8].mxu0 }
 0x1eb   : > { %6637 = vmatpush3.bf16.msra.mxu1 %v7128_v7  ;;  %v6315_v40 = vpop.f32.mrb[9].mxu0 }
 0x1ec   : > { %6638 = vmatprep.subr.bf16.mxu1 %v7131_v36  ;;  %v6316_v42 = vadd.f32 %v6315_v40, %v6314_v38  ;;  %v6317_v43 = vpop.f32.mrb[10].mxu0  ;;  %v7166_v36 = vld [vmem:[%s7370_s8 + $0x830] sm:$0xff]   ;;  %v7169_v38 = vld [vmem:[%s7370_s8 + $0x878] sm:$0xff]  }
 0x1ed   : > { %6617 = vmatpush3.bf16.msra.mxu0 %v7130_v37  ;;  %v6336_v44 = vpop.f32.mrb[8].mxu1  ;;  %v6318_v46 = vpop.f32.mrb[11].mxu0 }
 0x1ee   : > { %v6337_v47 = vpop.f32.mrb[9].mxu1  ;;  %6618 = vmatprep.subr.bf16.mxu0 %v7133_v30  ;;  %v5633_v54 = vsel %vm5632_vm0, %v6316_v42, 0.0  ;;  %v7168_v42 = vld [vmem:[%s7370_s8 + $0x8b0] sm:$0xff]  }
 0x1ef   : > { %v6338_v49 = vadd.f32 %v6337_v47, %v6336_v44  ;;  %6639 = vmatpush3.bf16.msra.mxu1 %v7132_v39  ;;  %v6339_v13 = vpop.f32.mrb[10].mxu1  ;;  %v7170_v47 = vld [vmem:[%s7370_s8 + $0x838] sm:$0xff]  }
 0x1f0   : > { %v6340_v51 = vpop.f32.mrb[11].mxu1  ;;  %6640 = vmatprep.subr.bf16.mxu1 %v7135_v41  ;;  %v7173_v13 = vld [vmem:[%s7370_s8 + $0x940] sm:$0xff]  }
 0x1f1   : > { %v5634_v56 = vsel %vm5632_vm0, %v6338_v49, 0.0  ;;  %6619 = vmatpush3.bf16.msra.mxu0 %v7134_v27  ;;  %v7171_v27 = vld [vmem:[%s7370_s8 + $0x8f8] sm:$0xff]  }
 0x1f2   : > { %v8004_v59 = vadd.f32 %v5634_v56, %v5633_v54  ;;  %6620 = vmatprep.subr.bf16.mxu0 %v7137_v45  ;;  %v8047_v45 = vld.sshfl [vmem:[#allocation2 + $0x24] sm:$0x11 pattern:$0x75316420]  ;;  %v7172_v51 = vld [vmem:[%s7370_s8 + $0x8b8] sm:$0xff]  }
 0x1f3   : > { %6641 = vmatpush3.bf16.msra.mxu1 %v7136_v50  ;;  %v8054_v50 = vld.sshfl [vmem:[#allocation2 + $0x26] sm:$0x11 pattern:$0x75316420] }
 0x1f4   : > { %6642 = vmatprep.subr.bf16.mxu1 %v7139_v52  ;;  %v4674_v52 = vcombine.high %v8047_v45, %v8047_v45  ;;  %v7175_v54 = vld [vmem:[%s7370_s8 + $0x9c0] sm:$0xff]  }
 0x1f5   : > { %6621 = vmatpush3.bf16.msra.mxu0 %v7138_v57  ;;  %v7174_v56 = vld [vmem:[%s7370_s8 + $0x900] sm:$0xff]   ;;  %v4835_v57 = vcombine.high %v8054_v50, %v8054_v50 }
 0x1f6   : > { %6650 = vmatprep.subr.bf16.mxu0 %v7141_v60  ;;  %v4688_v60 = vrot.slane %v4674_v52, %v7466_v10  ;;  %v7208_v52 = vld [vmem:[%s7370_s8 + $0xa80] sm:$0xff]  }
 0x1f7   : > { %6643 = vmatpush3.bf16.msra.mxu1 %v7140_v61  ;;  %v7176_v61 = vld [vmem:[%s7370_s8 + $0x980] sm:$0xff]   ;;  %v4849_v48 = vrot.slane %v4835_v57, %v7466_v10  ;;  %v7210_v57 = vld [vmem:[%s7370_s8 + $0xa08] sm:$0xff]  }
 0x1f8   : > { %4176 = vmatmul.mubr.bf16.vlgmr.msra.gmra.mrb[36].mxu0 %v4037_v2  ;;  %6672 = vmatprep.subr.bf16.mxu1 %v7143_v63  ;;  %v7179_v63 = vld [vmem:[%s7370_s8 + $0x9c8] sm:$0xff]  }
 0x1f9   : > { %6651 = vmatpush3.bf16.msra.mxu0 %v7142_v0  ;;  %4497 = vmatprep.mubr.bf16.mxu0 %v4366_v34  ;;  %v7178_v0 = vld [vmem:[%s7370_s8 + $0x908] sm:$0xff]   ;;  %v7181_v34 = vld [vmem:[%s7370_s8 + $0x950] sm:$0xff]  }
 0x1fa   : > { %4337 = vmatmul.mubr.bf16.vlgmr.msra.gmra.mrb[36].mxu1 %v4198_v8  ;;  %6652 = vmatprep.subr.bf16.mxu0 %v7145_v55  ;;  %v7180_v2 = vld [vmem:[%s7370_s8 + $0x988] sm:$0xff]   ;;  %v7182_v55 = vld [vmem:[%s7370_s8 + $0x910] sm:$0xff]   ;;  %v7187_v8 = vld [vmem:[%s7370_s8 + $0x9d8] sm:$0xff]  }
 0x1fb   : > { %6673 = vmatpush3.bf16.msra.mxu1 %v7144_v5  ;;  %4658 = vmatprep.mubr.bf16.mxu1 %v4527_v6  ;;  %v7185_v5 = vld [vmem:[%s7370_s8 + $0x958] sm:$0xff]   ;;  %v7184_v6 = vld [vmem:[%s7370_s8 + $0x990] sm:$0xff]  }
 0x1fc   : > { %6674 = vmatprep.subr.bf16.mxu1 %v7147_v9  ;;  %v7186_v9 = vld [vmem:[%s7370_s8 + $0x918] sm:$0xff]  }
 0x1fd   : > { %6653 = vmatpush3.bf16.msra.mxu0 %v7146_v11  ;;  %v7189_v11 = vld [vmem:[%s7370_s8 + $0x960] sm:$0xff]  }
 0x1fe   : > { %6654 = vmatprep.subr.bf16.mxu0 %v7149_v1  ;;  %v7188_v1 = vld [vmem:[%s7370_s8 + $0x998] sm:$0xff]  }
 0x1ff   : > { %6675 = vmatpush3.bf16.msra.mxu1 %v7148_v12  ;;  %v7191_v12 = vld [vmem:[%s7370_s8 + $0x9e0] sm:$0xff]  }
 0x200   : > { %6676 = vmatprep.subr.bf16.mxu1 %v7151_v14  ;;  %v7190_v14 = vld [vmem:[%s7370_s8 + $0x920] sm:$0xff]  }
 0x201   : > { %6655 = vmatpush3.bf16.msra.mxu0 %v7150_v3  ;;  %v7193_v3 = vld [vmem:[%s7370_s8 + $0x968] sm:$0xff]  }
 0x202   : > { %6656 = vmatprep.subr.bf16.mxu0 %v7153_v15  ;;  %v7192_v15 = vld [vmem:[%s7370_s8 + $0x9a0] sm:$0xff]  }
 0x203   : > { %6677 = vmatpush3.bf16.msra.mxu1 %v7152_v16  ;;  %v7195_v16 = vld [vmem:[%s7370_s8 + $0x9e8] sm:$0xff]  }
 0x204   : > { %6678 = vmatprep.subr.bf16.mxu1 %v7155_v17  ;;  %v7194_v17 = vld [vmem:[%s7370_s8 + $0x928] sm:$0xff]  }
 0x205   : > { %6657 = vmatpush3.bf16.msra.mxu0 %v7154_v29  ;;  %v7197_v29 = vld [vmem:[%s7370_s8 + $0x970] sm:$0xff]  }
 0x206   : > { %6658 = vmatprep.subr.bf16.mxu0 %v7157_v18 }
 0x207   : > { %6679 = vmatpush3.bf16.msra.mxu1 %v7156_v19  ;;  %v7196_v19 = vld [vmem:[%s7370_s8 + $0x9a8] sm:$0xff]  }
 0x208   : > { %6680 = vmatprep.subr.bf16.mxu1 %v7159_v20 }
 0x209   : > { %6659 = vmatpush3.bf16.msra.mxu0 %v7158_v21  ;;  %v7199_v21 = vld [vmem:[%s7370_s8 + $0x9f0] sm:$0xff]  }
 0x20a   : > { %6660 = vmatprep.subr.bf16.mxu0 %v7161_v22 }
 0x20b   : > { %v6358_v26 = vpop.f32.mrb[12].mxu0  ;;  %6681 = vmatpush3.bf16.msra.mxu1 %v7160_v4 }
 0x20c   : > { %v6359_v31 = vpop.f32.mrb[13].mxu0  ;;  %6682 = vmatprep.subr.bf16.mxu1 %v7163_v23 }
 0x20d   : > { %v6360_v33 = vadd.f32 %v6359_v31, %v6358_v26  ;;  %v6361_v35 = vpop.f32.mrb[14].mxu0  ;;  %v6380_v7 = vpop.f32.mrb[12].mxu1  ;;  %6661 = vmatpush3.bf16.msra.mxu0 %v7162_v24  ;;  %v7198_v24 = vld [vmem:[%s7370_s8 + $0x930] sm:$0xff]  }
 0x20e   : > { %v6362_v37 = vpop.f32.mrb[15].mxu0  ;;  %v6381_v30 = vpop.f32.mrb[13].mxu1  ;;  %6662 = vmatprep.subr.bf16.mxu0 %v7165_v25  ;;  %v7200_v35 = vld [vmem:[%s7370_s8 + $0x9b0] sm:$0xff]  }
 0x20f   : > { %v5636_v39 = vsel %vm5632_vm0, %v6360_v33, 0.0  ;;  %v6382_v40 = vadd.f32 %v6381_v30, %v6380_v7  ;;  %v6383_v41 = vpop.f32.mrb[14].mxu1  ;;  %6683 = vmatpush3.bf16.msra.mxu1 %v7164_v28  ;;  %v7201_v28 = vld [vmem:[%s7370_s8 + $0x978] sm:$0xff]  }
 0x210   : > { %v5637_v43 = vadd.f32 %v5636_v39, %v8004_v59  ;;  %v6384_v44 = vpop.f32.mrb[15].mxu1  ;;  %6684 = vmatprep.subr.bf16.mxu1 %v7167_v32  ;;  %v7177_v59 = vld [vmem:[%s7370_s8 + $0x948] sm:$0xff]   ;;  %v7203_v37 = vld [vmem:[%s7370_s8 + $0x9f8] sm:$0xff]   ;;  %v7205_v41 = vld [vmem:[%s7370_s8 + $0xa40] sm:$0xff]  }
 0x211   : > { %v5638_v46 = vsel %vm5632_vm0, %v6382_v40, 0.0  ;;  %6663 = vmatpush3.bf16.msra.mxu0 %v7166_v36  ;;  %v8098_v30 = vld.sshfl [vmem:[#allocation2 + $0x28] sm:$0x11 pattern:$0x75316420]  ;;  %v7202_v39 = vld [vmem:[%s7370_s8 + $0x938] sm:$0xff]  }
 0x212   : > { %v8051_v49 = vadd.f32 %v5638_v46, %v5637_v43  ;;  %6664 = vmatprep.subr.bf16.mxu0 %v7169_v38  ;;  %v7204_v43 = vld [vmem:[%s7370_s8 + $0x9b8] sm:$0xff]   ;;  %v4996_v44 = vcombine.high %v8098_v30, %v8098_v30  ;;  %v7206_v46 = vld [vmem:[%s7370_s8 + $0xa00] sm:$0xff]  }
 0x213   : > { %6685 = vmatpush3.bf16.msra.mxu1 %v7168_v42  ;;  %v8105_v42 = vld.sshfl [vmem:[#allocation2 + $0x2a] sm:$0x11 pattern:$0x75316420] }
 0x214   : > { %6686 = vmatprep.subr.bf16.mxu1 %v7171_v27  ;;  %v7207_v27 = vld [vmem:[%s7370_s8 + $0xac0] sm:$0xff]  }
 0x215   : > { %6665 = vmatpush3.bf16.msra.mxu0 %v7170_v47  ;;  %v5157_v47 = vcombine.high %v8105_v42, %v8105_v42 }
 0x216   : > { %6694 = vmatprep.subr.bf16.mxu0 %v7173_v13  ;;  %v7209_v13 = vld [vmem:[%s7370_s8 + $0xa48] sm:$0xff]  }
 0x217   : > { %6687 = vmatpush3.bf16.msra.mxu1 %v7172_v51  ;;  %v5010_v51 = vrot.slane %v4996_v44, %v7466_v10  ;;  %v7240_v44 = vld [vmem:[%s7370_s8 + $0xb80] sm:$0xff]  }
 0x218   : > { %4498 = vmatmul.mubr.bf16.vlgmr.msra.gmra.mrb[40].mxu0 %v4359_v58  ;;  %6716 = vmatprep.subr.bf16.mxu1 %v7175_v54  ;;  %v4842_v54 = vrot.slane %v8054_v50, %v7466_v10  ;;  %v7213_v58 = vld [vmem:[%s7370_s8 + $0xa50] sm:$0xff]  }
 0x219   : > { %6695 = vmatpush3.bf16.msra.mxu0 %v7174_v56  ;;  %4819 = vmatprep.mubr.bf16.mxu0 %v4688_v60  ;;  %v7211_v56 = vld [vmem:[%s7370_s8 + $0xac8] sm:$0xff]   ;;  %v7215_v50 = vld [vmem:[%s7370_s8 + $0xad0] sm:$0xff]  }
 0x21a   : > { %4659 = vmatmul.mubr.bf16.vlgmr.msra.gmra.mrb[40].mxu1 %v4520_v62  ;;  %6696 = vmatprep.subr.bf16.mxu0 %v7177_v59  ;;  %v7212_v59 = vld [vmem:[%s7370_s8 + $0xa88] sm:$0xff]   ;;  %v7214_v60 = vld [vmem:[%s7370_s8 + $0xa10] sm:$0xff]  }
 0x21b   : > { %6717 = vmatpush3.bf16.msra.mxu1 %v7176_v61  ;;  %4980 = vmatprep.mubr.bf16.mxu1 %v4849_v48  ;;  %v7217_v61 = vld [vmem:[%s7370_s8 + $0xa58] sm:$0xff]   ;;  %v7216_v62 = vld [vmem:[%s7370_s8 + $0xa90] sm:$0xff]  }
 0x21c   : > { %6718 = vmatprep.subr.bf16.mxu1 %v7179_v63  ;;  %v7219_v63 = vld [vmem:[%s7370_s8 + $0xad8] sm:$0xff]  }
 0x21d   : > { %6697 = vmatpush3.bf16.msra.mxu0 %v7178_v0  ;;  %v7218_v48 = vld [vmem:[%s7370_s8 + $0xa18] sm:$0xff]   ;;  %v7221_v0 = vld [vmem:[%s7370_s8 + $0xa60] sm:$0xff]  }
 0x21e   : > { %6698 = vmatprep.subr.bf16.mxu0 %v7181_v34  ;;  %v7220_v34 = vld [vmem:[%s7370_s8 + $0xa98] sm:$0xff]  }
 0x21f   : > { %6719 = vmatpush3.bf16.msra.mxu1 %v7180_v2  ;;  %v7223_v2 = vld [vmem:[%s7370_s8 + $0xae0] sm:$0xff]  }
 0x220   : > { %6720 = vmatprep.subr.bf16.mxu1 %v7183_v53  ;;  %v7222_v53 = vld [vmem:[%s7370_s8 + $0xa20] sm:$0xff]  }
 0x221   : > { %6699 = vmatpush3.bf16.msra.mxu0 %v7182_v55  ;;  %v7225_v55 = vld [vmem:[%s7370_s8 + $0xa68] sm:$0xff]  }
 0x222   : > { %6700 = vmatprep.subr.bf16.mxu0 %v7185_v5  ;;  %v7224_v5 = vld [vmem:[%s7370_s8 + $0xaa0] sm:$0xff]  }
 0x223   : > { %6721 = vmatpush3.bf16.msra.mxu1 %v7184_v6  ;;  %v7227_v6 = vld [vmem:[%s7370_s8 + $0xae8] sm:$0xff]  }
 0x224   : > { %6722 = vmatprep.subr.bf16.mxu1 %v7187_v8  ;;  %v7226_v8 = vld [vmem:[%s7370_s8 + $0xa28] sm:$0xff]  }
 0x225   : > { %6701 = vmatpush3.bf16.msra.mxu0 %v7186_v9  ;;  %v7229_v9 = vld [vmem:[%s7370_s8 + $0xa70] sm:$0xff]  }
 0x226   : > { %6702 = vmatprep.subr.bf16.mxu0 %v7189_v11 }
 0x227   : > { %6723 = vmatpush3.bf16.msra.mxu1 %v7188_v1  ;;  %v7228_v1 = vld [vmem:[%s7370_s8 + $0xaa8] sm:$0xff]  }
 0x228   : > { %6724 = vmatprep.subr.bf16.mxu1 %v7191_v12 }
 0x229   : > { %6703 = vmatpush3.bf16.msra.mxu0 %v7190_v14  ;;  %v7231_v14 = vld [vmem:[%s7370_s8 + $0xaf0] sm:$0xff]  }
 0x22a   : > { %6704 = vmatprep.subr.bf16.mxu0 %v7193_v3 }
 0x22b   : > { %v6402_v18 = vpop.f32.mrb[16].mxu0  ;;  %6725 = vmatpush3.bf16.msra.mxu1 %v7192_v15 }
 0x22c   : > { %v6403_v20 = vpop.f32.mrb[17].mxu0  ;;  %6726 = vmatprep.subr.bf16.mxu1 %v7195_v16 }
 0x22d   : > { %v6404_v22 = vadd.f32 %v6403_v20, %v6402_v18  ;;  %v6405_v4 = vpop.f32.mrb[18].mxu0  ;;  %v6424_v23 = vpop.f32.mrb[16].mxu1  ;;  %6705 = vmatpush3.bf16.msra.mxu0 %v7194_v17  ;;  %v7230_v17 = vld [vmem:[%s7370_s8 + $0xa30] sm:$0xff]  }
 0x22e   : > { %v6406_v25 = vpop.f32.mrb[19].mxu0  ;;  %v6425_v26 = vpop.f32.mrb[17].mxu1  ;;  %6706 = vmatprep.subr.bf16.mxu0 %v7197_v29  ;;  %v7232_v4 = vld [vmem:[%s7370_s8 + $0xab0] sm:$0xff]  }
 0x22f   : > { %v5640_v31 = vsel %vm5632_vm0, %v6404_v22, 0.0  ;;  %v6426_v32 = vadd.f32 %v6425_v26, %v6424_v23  ;;  %v6427_v33 = vpop.f32.mrb[18].mxu1  ;;  %6727 = vmatpush3.bf16.msra.mxu1 %v7196_v19  ;;  %v7233_v19 = vld [vmem:[%s7370_s8 + $0xa78] sm:$0xff]  }
 0x230   : > { %v5641_v7 = vadd.f32 %v5640_v31, %v8051_v49  ;;  %v6428_v36 = vpop.f32.mrb[19].mxu1  ;;  %6728 = vmatprep.subr.bf16.mxu1 %v7199_v21  ;;  %v4681_v49 = vrot.slane %v8047_v45, %v7466_v10  ;;  %v5171_v45 = vrot.slane %v5157_v47, %v7466_v10  ;;  %v7235_v25 = vld [vmem:[%s7370_s8 + $0xaf8] sm:$0xff]   ;;  %v8149_v26 = vld.sshfl [vmem:[#allocation2 + $0x2c] sm:$0x11 pattern:$0x75316420] }
 0x231   : > { %v5642_v38 = vsel %vm5632_vm0, %v6426_v32, 0.0  ;;  %6707 = vmatpush3.bf16.msra.mxu0 %v7198_v24  ;;  %v7234_v31 = vld [vmem:[%s7370_s8 + $0xa38] sm:$0xff]   ;;  %v7237_v33 = vld [vmem:[%s7370_s8 + $0xb40] sm:$0xff]   ;;  %v5318_v36 = vcombine.high %v8149_v26, %v8149_v26  ;;  %v7242_v47 = vld [vmem:[%s7370_s8 + $0xb08] sm:$0xff]  }
 0x232   : > { %v8102_v40 = vadd.f32 %v5642_v38, %v5641_v7  ;;  %6708 = vmatprep.subr.bf16.mxu0 %v7201_v28  ;;  %v7236_v7 = vld [vmem:[%s7370_s8 + $0xab8] sm:$0xff]   ;;  %v7238_v38 = vld [vmem:[%s7370_s8 + $0xb00] sm:$0xff]  }
 0x233   : > { %6729 = vmatpush3.bf16.msra.mxu1 %v7200_v35  ;;  %v8156_v35 = vld.sshfl [vmem:[#allocation2 + $0x2e] sm:$0x11 pattern:$0x75316420] }
 0x234   : > { %6730 = vmatprep.subr.bf16.mxu1 %v7203_v37  ;;  %v7239_v37 = vld [vmem:[%s7370_s8 + $0xbc0] sm:$0xff]  }
 0x235   : > { %6709 = vmatpush3.bf16.msra.mxu0 %v7202_v39  ;;  %v5479_v39 = vcombine.high %v8156_v35, %v8156_v35 }
 0x236   : > { %6738 = vmatprep.subr.bf16.mxu0 %v7205_v41  ;;  %v7241_v41 = vld [vmem:[%s7370_s8 + $0xb48] sm:$0xff]  }
 0x237   : > { %6731 = vmatpush3.bf16.msra.mxu1 %v7204_v43  ;;  %v5332_v43 = vrot.slane %v5318_v36, %v7466_v10 }
 0x238   : > { %4820 = vmatmul.mubr.bf16.vlgmr.msra.gmra.mrb[44].mxu0 %v4681_v49  ;;  %6760 = vmatprep.subr.bf16.mxu1 %v7207_v27  ;;  %v5164_v27 = vrot.slane %v8105_v42, %v7466_v10  ;;  %v7245_v49 = vld [vmem:[%s7370_s8 + $0xb50] sm:$0xff]  }
 0x239   : > { %6739 = vmatpush3.bf16.msra.mxu0 %v7206_v46  ;;  %5141 = vmatprep.mubr.bf16.mxu0 %v5010_v51  ;;  %v7243_v46 = vld [vmem:[%s7370_s8 + $0xbc8] sm:$0xff]   ;;  %v7247_v42 = vld [vmem:[%s7370_s8 + $0xbd0] sm:$0xff]  }
 0x23a   : > { %4981 = vmatmul.mubr.bf16.vlgmr.msra.gmra.mrb[44].mxu1 %v4842_v54  ;;  %6740 = vmatprep.subr.bf16.mxu0 %v7209_v13  ;;  %v7244_v13 = vld [vmem:[%s7370_s8 + $0xb88] sm:$0xff]   ;;  %v7246_v51 = vld [vmem:[%s7370_s8 + $0xb10] sm:$0xff]  }
 0x23b   : > { %6761 = vmatpush3.bf16.msra.mxu1 %v7208_v52  ;;  %5302 = vmatprep.mubr.bf16.mxu1 %v5171_v45  ;;  %v7249_v52 = vld [vmem:[%s7370_s8 + $0xb58] sm:$0xff]   ;;  %v7248_v54 = vld [vmem:[%s7370_s8 + $0xb90] sm:$0xff]  }
 0x23c   : > { %6762 = vmatprep.subr.bf16.mxu1 %v7211_v56  ;;  %v7251_v56 = vld [vmem:[%s7370_s8 + $0xbd8] sm:$0xff]  }
 0x23d   : > { %6741 = vmatpush3.bf16.msra.mxu0 %v7210_v57  ;;  %v7250_v45 = vld [vmem:[%s7370_s8 + $0xb18] sm:$0xff]   ;;  %v7253_v57 = vld [vmem:[%s7370_s8 + $0xb60] sm:$0xff]  }
 0x23e   : > { %6742 = vmatprep.subr.bf16.mxu0 %v7213_v58  ;;  %v7252_v58 = vld [vmem:[%s7370_s8 + $0xb98] sm:$0xff]  }
 0x23f   : > { %6763 = vmatpush3.bf16.msra.mxu1 %v7212_v59  ;;  %v7255_v59 = vld [vmem:[%s7370_s8 + $0xbe0] sm:$0xff]  }
 0x240   : > { %6764 = vmatprep.subr.bf16.mxu1 %v7215_v50  ;;  %v7254_v50 = vld [vmem:[%s7370_s8 + $0xb20] sm:$0xff]  }
 0x241   : > { %6743 = vmatpush3.bf16.msra.mxu0 %v7214_v60  ;;  %v7257_v60 = vld [vmem:[%s7370_s8 + $0xb68] sm:$0xff]  }
 0x242   : > { %6744 = vmatprep.subr.bf16.mxu0 %v7217_v61  ;;  %v7256_v61 = vld [vmem:[%s7370_s8 + $0xba0] sm:$0xff]  }
 0x243   : > { %6765 = vmatpush3.bf16.msra.mxu1 %v7216_v62  ;;  %v7259_v62 = vld [vmem:[%s7370_s8 + $0xbe8] sm:$0xff]  }
 0x244   : > { %6766 = vmatprep.subr.bf16.mxu1 %v7219_v63  ;;  %v7258_v63 = vld [vmem:[%s7370_s8 + $0xb28] sm:$0xff]  }
 0x245   : > { %6745 = vmatpush3.bf16.msra.mxu0 %v7218_v48  ;;  %v7261_v48 = vld [vmem:[%s7370_s8 + $0xb70] sm:$0xff]  }
 0x246   : > { %6746 = vmatprep.subr.bf16.mxu0 %v7221_v0 }
 0x247   : > { %6767 = vmatpush3.bf16.msra.mxu1 %v7220_v34  ;;  %v7260_v34 = vld [vmem:[%s7370_s8 + $0xba8] sm:$0xff]  }
 0x248   : > { %6768 = vmatprep.subr.bf16.mxu1 %v7223_v2 }
 0x249   : > { %6747 = vmatpush3.bf16.msra.mxu0 %v7222_v53  ;;  %v7263_v53 = vld [vmem:[%s7370_s8 + $0xbf0] sm:$0xff]  }
 0x24a   : > { %6748 = vmatprep.subr.bf16.mxu0 %v7225_v55 }
 0x24b   : > { %v6446_v11 = vpop.f32.mrb[20].mxu0  ;;  %6769 = vmatpush3.bf16.msra.mxu1 %v7224_v5 }
 0x24c   : > { %v6447_v12 = vpop.f32.mrb[21].mxu0  ;;  %6770 = vmatprep.subr.bf16.mxu1 %v7227_v6 }
 0x24d   : > { %v6448_v3 = vadd.f32 %v6447_v12, %v6446_v11  ;;  %v6449_v15 = vpop.f32.mrb[22].mxu0  ;;  %v6468_v16 = vpop.f32.mrb[20].mxu1  ;;  %6749 = vmatpush3.bf16.msra.mxu0 %v7226_v8  ;;  %v7262_v8 = vld [vmem:[%s7370_s8 + $0xb30] sm:$0xff]  }
 0x24e   : > { %v6450_v29 = vpop.f32.mrb[23].mxu0  ;;  %v6469_v18 = vpop.f32.mrb[21].mxu1  ;;  %6750 = vmatprep.subr.bf16.mxu0 %v7229_v9  ;;  %v7264_v15 = vld [vmem:[%s7370_s8 + $0xbb0] sm:$0xff]  }
 0x24f   : > { %v5644_v20 = vsel %vm5632_vm0, %v6448_v3, 0.0  ;;  %v6470_v21 = vadd.f32 %v6469_v18, %v6468_v16  ;;  %v6471_v22 = vpop.f32.mrb[22].mxu1  ;;  %6771 = vmatpush3.bf16.msra.mxu1 %v7228_v1  ;;  %v7265_v1 = vld [vmem:[%s7370_s8 + $0xb78] sm:$0xff]  }
 0x250   : > { %v5645_v23 = vadd.f32 %v5644_v20, %v8102_v40  ;;  %v6472_v24 = vpop.f32.mrb[23].mxu1  ;;  %6772 = vmatprep.subr.bf16.mxu1 %v7231_v14  ;;  %v5003_v40 = vrot.slane %v8098_v30, %v7466_v10  ;;  %v5493_v30 = vrot.slane %v5479_v39, %v7466_v10  ;;  %v7267_v29 = vld [vmem:[%s7370_s8 + $0xbf8] sm:$0xff]   ;;  %v5325_v22 = vrot.slane %v8149_v26, %v7466_v10 }
 0x251   : > { %v5646_v28 = vsel %vm5632_vm0, %v6470_v21, 0.0  ;;  %6751 = vmatpush3.bf16.msra.mxu0 %v7230_v17  ;;  %v7268_v21 = vld [vmem:[%s7370_s8 + $0xbb8] sm:$0xff]  }
 0x252   : > { %v8153_v32 = vadd.f32 %v5646_v28, %v5645_v23  ;;  %6752 = vmatprep.subr.bf16.mxu0 %v7233_v19  ;;  %v7266_v19 = vld [vmem:[%s7370_s8 + $0xb38] sm:$0xff]  }
 0x253   : > { %6773 = vmatpush3.bf16.msra.mxu1 %v7232_v4  ;;  %v5486_v4 = vrot.slane %v8156_v35, %v7466_v10 }
 0x254   : > { %6774 = vmatprep.subr.bf16.mxu1 %v7235_v25 }
 0x255   : > { %6753 = vmatpush3.bf16.msra.mxu0 %v7234_v31 }
 0x256   : > { %6782 = vmatprep.subr.bf16.mxu0 %v7237_v33 }
 0x257   : > { %6775 = vmatpush3.bf16.msra.mxu1 %v7236_v7 }
 0x258   : > { %5142 = vmatmul.mubr.bf16.vlgmr.msra.gmra.mrb[48].mxu0 %v5003_v40  ;;  %6804 = vmatprep.subr.bf16.mxu1 %v7239_v37 }
 0x259   : > { %6783 = vmatpush3.bf16.msra.mxu0 %v7238_v38  ;;  %5463 = vmatprep.mubr.bf16.mxu0 %v5332_v43 }
 0x25a   : > { %5303 = vmatmul.mubr.bf16.vlgmr.msra.gmra.mrb[48].mxu1 %v5164_v27  ;;  %6784 = vmatprep.subr.bf16.mxu0 %v7241_v41 }
 0x25b   : > { %6805 = vmatpush3.bf16.msra.mxu1 %v7240_v44  ;;  %5624 = vmatprep.mubr.bf16.mxu1 %v5493_v30 }
 0x25c   : > { %6806 = vmatprep.subr.bf16.mxu1 %v7243_v46 }
 0x25d   : > { %6785 = vmatpush3.bf16.msra.mxu0 %v7242_v47 }
 0x25e   : > { %6786 = vmatprep.subr.bf16.mxu0 %v7245_v49 }
 0x25f   : > { %6807 = vmatpush3.bf16.msra.mxu1 %v7244_v13 }
 0x260   : > { %6808 = vmatprep.subr.bf16.mxu1 %v7247_v42 }
 0x261   : > { %6787 = vmatpush3.bf16.msra.mxu0 %v7246_v51 }
 0x262   : > { %6788 = vmatprep.subr.bf16.mxu0 %v7249_v52 }
 0x263   : > { %6809 = vmatpush3.bf16.msra.mxu1 %v7248_v54 }
 0x264   : > { %6810 = vmatprep.subr.bf16.mxu1 %v7251_v56 }
 0x265   : > { %6789 = vmatpush3.bf16.msra.mxu0 %v7250_v45 }
 0x266   : > { %6790 = vmatprep.subr.bf16.mxu0 %v7253_v57 }
 0x267   : > { %6811 = vmatpush3.bf16.msra.mxu1 %v7252_v58 }
 0x268   : > { %6812 = vmatprep.subr.bf16.mxu1 %v7255_v59 }
 0x269   : > { %6791 = vmatpush3.bf16.msra.mxu0 %v7254_v50 }
 0x26a   : > { %6792 = vmatprep.subr.bf16.mxu0 %v7257_v60 }
 0x26b   : > { %v6490_v0 = vpop.f32.mrb[24].mxu0  ;;  %6813 = vmatpush3.bf16.msra.mxu1 %v7256_v61 }
 0x26c   : > { %v6491_v2 = vpop.f32.mrb[25].mxu0  ;;  %6814 = vmatprep.subr.bf16.mxu1 %v7259_v62 }
 0x26d   : > { %v6492_v55 = vadd.f32 %v6491_v2, %v6490_v0  ;;  %v6493_v5 = vpop.f32.mrb[26].mxu0  ;;  %v6512_v6 = vpop.f32.mrb[24].mxu1  ;;  %6793 = vmatpush3.bf16.msra.mxu0 %v7258_v63 }
 0x26e   : > { %v6494_v9 = vpop.f32.mrb[27].mxu0  ;;  %v6513_v11 = vpop.f32.mrb[25].mxu1  ;;  %6794 = vmatprep.subr.bf16.mxu0 %v7261_v48 }
 0x26f   : > { %v5648_v12 = vsel %vm5632_vm0, %v6492_v55, 0.0  ;;  %v6514_v14 = vadd.f32 %v6513_v11, %v6512_v6  ;;  %v6515_v3 = vpop.f32.mrb[26].mxu1  ;;  %6815 = vmatpush3.bf16.msra.mxu1 %v7260_v34 }
 0x270   : > { %v5649_v16 = vadd.f32 %v5648_v12, %v8153_v32  ;;  %v6516_v17 = vpop.f32.mrb[27].mxu1  ;;  %6816 = vmatprep.subr.bf16.mxu1 %v7263_v53 }
 0x271   : > { %v5650_v18 = vsel %vm5632_vm0, %v6514_v14, 0.0  ;;  %6795 = vmatpush3.bf16.msra.mxu0 %v7262_v8 }
 0x272   : > { %v5651_v20 = vadd.f32 %v5650_v18, %v5649_v16  ;;  %6796 = vmatprep.subr.bf16.mxu0 %v7265_v1 }
 0x273   : > { %6817 = vmatpush3.bf16.msra.mxu1 %v7264_v15 }
 0x274   : > { %6818 = vmatprep.subr.bf16.mxu1 %v7267_v29 }
 0x275   : > { %6797 = vmatpush3.bf16.msra.mxu0 %v7266_v19 }
 0x277   : > { %6819 = vmatpush3.bf16.msra.mxu1 %v7268_v21 }
 0x278   : > { %5464 = vmatmul.mubr.bf16.vlgmr.msra.gmra.mrb[52].mxu0 %v5325_v22 }
 0x27a   : > { %5625 = vmatmul.mubr.bf16.vlgmr.msra.gmra.mrb[52].mxu1 %v5486_v4 }
 0x28b   : > { %v6534_v23 = vpop.f32.mrb[28].mxu0 }
 0x28c   : > { %v6535_v24 = vpop.f32.mrb[29].mxu0 }
 0x28d   : > { %v6536_v25 = vadd.f32 %v6535_v24, %v6534_v23  ;;  %v6537_v28 = vpop.f32.mrb[30].mxu0  ;;  %v6556_v31 = vpop.f32.mrb[28].mxu1 }
 0x28e   : > { %v6538_v32 = vpop.f32.mrb[31].mxu0  ;;  %v6557_v33 = vpop.f32.mrb[29].mxu1 }
 0x28f   : > { %v5652_v7 = vsel %vm5632_vm0, %v6536_v25, 0.0  ;;  %v6558_v36 = vadd.f32 %v6557_v33, %v6556_v31  ;;  %v6559_v37 = vpop.f32.mrb[30].mxu1 }
 0x290   : > { %v5653_v38 = vadd.f32 %v5652_v7, %v5651_v20  ;;  %v6560_v39 = vpop.f32.mrb[31].mxu1 }
 0x291   : > { %v5654_v26 = vsel %vm5632_vm0, %v6558_v36, 0.0 }
 0x292   : > { %v5655_v40 = vadd.f32 %v5654_v26, %v5653_v38 }
 0x2ab   : > { %v6578_v41 = vpop.f32.mrb[32].mxu0 }
 0x2ac   : > { %v6579_v43 = vpop.f32.mrb[33].mxu0 }
 0x2ad   : > { %v6580_v10 = vadd.f32 %v6579_v43, %v6578_v41  ;;  %v6581_v35 = vpop.f32.mrb[34].mxu0  ;;  %v6600_v44 = vpop.f32.mrb[32].mxu1 }
 0x2ae   : > { %v6582_v27 = vpop.f32.mrb[35].mxu0  ;;  %v6601_v46 = vpop.f32.mrb[33].mxu1 }
 0x2af   : > { %v5656_v30 = vsel %vm5632_vm0, %v6580_v10, 0.0  ;;  %v6602_v47 = vadd.f32 %v6601_v46, %v6600_v44  ;;  %v6603_v49 = vpop.f32.mrb[34].mxu1 }
 0x2b0   : > { %v5657_v13 = vadd.f32 %v5656_v30, %v5655_v40  ;;  %v6604_v42 = vpop.f32.mrb[35].mxu1 }
 0x2b1   : > { %v5658_v51 = vsel %vm5632_vm0, %v6602_v47, 0.0 }
 0x2b2   : > { %v5659_v52 = vadd.f32 %v5658_v51, %v5657_v13 }
 0x2cb   : > { %v6622_v54 = vpop.f32.mrb[36].mxu0 }
 0x2cc   : > { %v6623_v56 = vpop.f32.mrb[37].mxu0 }
 0x2cd   : > { %v6624_v45 = vadd.f32 %v6623_v56, %v6622_v54  ;;  %v6625_v57 = vpop.f32.mrb[38].mxu0  ;;  %v6644_v58 = vpop.f32.mrb[36].mxu1 }
 0x2ce   : > { %v6626_v59 = vpop.f32.mrb[39].mxu0  ;;  %v6645_v50 = vpop.f32.mrb[37].mxu1 }
 0x2cf   : > { %v5660_v60 = vsel %vm5632_vm0, %v6624_v45, 0.0  ;;  %v6646_v61 = vadd.f32 %v6645_v50, %v6644_v58  ;;  %v6647_v62 = vpop.f32.mrb[38].mxu1  ;;  %v5680_v59 = vld [vmem:[#allocation3] sm:$0x3] }
 0x2d0   : > { %v5661_v63 = vadd.f32 %v5660_v60, %v5659_v52  ;;  %v6648_v48 = vpop.f32.mrb[39].mxu1  ;;  %v5698_v62 = vld [vmem:[%s8272_s5 + $0x8] sm:$0xff] (!%p6289_p5) }
 0x2d1   : > { %v5662_v0 = vsel %vm5632_vm0, %v6646_v61, 0.0  ;;  %v5697_v61 = vld [vmem:[%s8272_s5] sm:$0xff] (!%p6289_p5)  ;;  %v7312_v48 = vmov (!%p6289_p5), 0.0|0.0  }
 0x2d2   : > { %v5663_v34 = vadd.f32 %v5662_v0, %v5661_v63  ;;  %v5699_v63 = vld [vmem:[%s8272_s5 + $0x10] sm:$0xff] (!%p6289_p5)  ;;  %6854 = vmatprep.subr.bf16.mxu0 (!%p6289_p5), %v7312_v48  ;;  %v6855_v0 = vpack.c.bf16 (!%p6289_p5), %v5698_v62, %v5697_v61 }
 0x2d4   : > { %6856 = vmatpush3.bf16.msra.mxu0 (!%p6289_p5), %v6855_v0 }
 0x2d5   : > { %6857 = vmatprep.subr.bf16.mxu0 (!%p6289_p5), %v7312_v48 }
 0x2eb   : > { %v6666_v2 = vpop.f32.mrb[40].mxu0 }
 0x2ec   : > { %v6667_v53 = vpop.f32.mrb[41].mxu0 }
 0x2ed   : > { %v6668_v55 = vadd.f32 %v6667_v53, %v6666_v2  ;;  %v6669_v5 = vpop.f32.mrb[42].mxu0  ;;  %v6688_v6 = vpop.f32.mrb[40].mxu1  ;;  %v7314_v2 = vmov (!%p6289_p5), 0.0  }
 0x2ee   : > { %v6670_v8 = vpop.f32.mrb[43].mxu0  ;;  %v6689_v9 = vpop.f32.mrb[41].mxu1  ;;  %6839 = vmatprep.mubr.msk.f32.mxu0 (!%p6289_p5), %vm7313_vm1, %v7314_v2 }
 0x2ef   : > { %v5664_v11 = vsel %vm5632_vm0, %v6668_v55, 0.0  ;;  %v6690_v1 = vadd.f32 %v6689_v9, %v6688_v6  ;;  %v6691_v12 = vpop.f32.mrb[42].mxu1  ;;  %v6290_v55 = vld [vmem:[%s8271_s4] ss:$0 sm:$0xff] (!%p6289_p5) }
 0x2f0   : > { %v5665_v14 = vadd.f32 %v5664_v11, %v5663_v34  ;;  %v6692_v3 = vpop.f32.mrb[43].mxu1  ;;  %v5700_v34 = vld [vmem:[%s8272_s5 + $0x18] sm:$0xff] (!%p6289_p5)  ;;  %v6291_v9 = vld [vmem:[%s8273_s6] ss:$0 sm:$0xff] (!%p6289_p5) }
 0x2f1   : > { %v5666_v15 = vsel %vm5632_vm0, %v6690_v1, 0.0  ;;  %v6858_v6 = vpack.c.bf16 (!%p6289_p5), %v5700_v34, %v5699_v63 }
 0x2f2   : > { %v5667_v16 = vadd.f32 %v5666_v15, %v5665_v14 }
 0x2f3   : > { %6859 = vmatpush3.bf16.msra.mxu0 (!%p6289_p5), %v6858_v6 }
 0x30b   : > { %v6710_v17 = vpop.f32.mrb[44].mxu0 }
 0x30c   : > { %v6711_v29 = vpop.f32.mrb[45].mxu0 }
 0x30d   : > { %v6712_v18 = vadd.f32 %v6711_v29, %v6710_v17  ;;  %v6713_v19 = vpop.f32.mrb[46].mxu0  ;;  %v6732_v20 = vpop.f32.mrb[44].mxu1 }
 0x30e   : > { %v6714_v21 = vpop.f32.mrb[47].mxu0  ;;  %v6733_v22 = vpop.f32.mrb[45].mxu1 }
 0x30f   : > { %v5668_v4 = vsel %vm5632_vm0, %v6712_v18, 0.0  ;;  %v6734_v23 = vadd.f32 %v6733_v22, %v6732_v20  ;;  %v6735_v24 = vpop.f32.mrb[46].mxu1 }
 0x310   : > { %v5669_v25 = vadd.f32 %v5668_v4, %v5667_v16  ;;  %v6736_v28 = vpop.f32.mrb[47].mxu1 }
 0x311   : > { %v5670_v31 = vsel %vm5632_vm0, %v6734_v23, 0.0 }
 0x312   : > { %v5671_v32 = vadd.f32 %v5670_v31, %v5669_v25 }
 0x32b   : > { %v6754_v33 = vpop.f32.mrb[48].mxu0 }
 0x32c   : > { %v6755_v7 = vpop.f32.mrb[49].mxu0 }
 0x32d   : > { %v6756_v36 = vadd.f32 %v6755_v7, %v6754_v33  ;;  %v6757_v37 = vpop.f32.mrb[50].mxu0  ;;  %v6776_v38 = vpop.f32.mrb[48].mxu1 }
 0x32e   : > { %v6758_v39 = vpop.f32.mrb[51].mxu0  ;;  %v6777_v26 = vpop.f32.mrb[49].mxu1 }
 0x32f   : > { %v5672_v40 = vsel %vm5632_vm0, %v6756_v36, 0.0  ;;  %v6778_v41 = vadd.f32 %v6777_v26, %v6776_v38  ;;  %v6779_v43 = vpop.f32.mrb[50].mxu1 }
 0x330   : > { %v5673_v10 = vadd.f32 %v5672_v40, %v5671_v32  ;;  %v6780_v35 = vpop.f32.mrb[51].mxu1 }
 0x331   : > { %v5674_v44 = vsel %vm5632_vm0, %v6778_v41, 0.0 }
 0x332   : > { %v5675_v27 = vadd.f32 %v5674_v44, %v5673_v10 }
 0x34b   : > { %v6798_v46 = vpop.f32.mrb[52].mxu0 }
 0x34c   : > { %v6799_v30 = vpop.f32.mrb[53].mxu0 }
 0x34d   : > { %v6800_v47 = vadd.f32 %v6799_v30, %v6798_v46  ;;  %v6801_v49 = vpop.f32.mrb[54].mxu0  ;;  %v6820_v13 = vpop.f32.mrb[52].mxu1 }
 0x34e   : > { %v6802_v42 = vpop.f32.mrb[55].mxu0  ;;  %v6821_v51 = vpop.f32.mrb[53].mxu1 }
 0x34f   : > { %v5676_v52 = vsel %vm5632_vm0, %v6800_v47, 0.0  ;;  %v6822_v54 = vadd.f32 %v6821_v51, %v6820_v13  ;;  %v6823_v56 = vpop.f32.mrb[54].mxu1 }
 0x350   : > { %v5677_v45 = vadd.f32 %v5676_v52, %v5675_v27  ;;  %v6824_v57 = vpop.f32.mrb[55].mxu1  ;;  %5686 = sbr.rel (%p6289_p5) target bundleno = 1081 (0x439), region = 56 }
 0x351   : > { %v5678_v58 = vsel %vm5632_vm0, %v6822_v54, 0.0 }
 0x352   : > { %v5679_v50 = vadd.f32 %v5678_v58, %v5677_v45 }
 0x354   : > { %v5681_v60 = vadd.f32 %v5680_v59, %v5679_v50 }
 0x356   : > { %5682 = vst.msk [vmem:[#allocation3] sm:$0x3] %vm5632_vm0, %v5681_v60 }
 0x35d   : > { %v5687_v53 = vld [vmem:[#allocation3] sm:$0x3] }
 0x35e   : > { %v5695_v5 = vadd.f32 %v6290_v55, %v5687_v53 }
 0x360   : > { %v5696_v8 = vmax.f32 %v5695_v5, 0.0 }
 0x362   : > { %6840 = vmatmul.mubr.msk.f32.vlgmr.msra.gmra.mrb[0].mxu0 %vm5708_vm2, %v5696_v8 }
 0x435   : > { %v5778_v11 = vpop.f32.mrb[0].mxu0 }
 0x436   : > { %v5779_v1 = vadd.f32 %v6291_v9, %v5778_v11  ;;  %v6841_v12 = vpop.f32.mrb[1].mxu0 }
 0x438   : > { %5783 = vst.msk [vmem:[#allocation4] sm:$0x3] %vm5782_vm3, %v5779_v1 }
 0x439 PF: > { %p6864_p6 = scmp.eq.s32.totalorder %s7362_s25, 1  ;;  %s7315_s22 = smov [#allocation4]  }
 0x43a   : > { %s5791_s23 = sshll.u32 %s7315_s22, 4  ;;  %s5792_s23 = int_to_ptr.vmem [resolvable:$true] %s5791_s23 }
 0x43b   : > { %s7269_s27 = scalar_lea.vmem %s5792_s23, 32  ;;  %p7276_p10 = scmp.lt.s32.totalorder %s5792_s23, %s5792_s23 }
 0x43c   : > { %p7270_p7 = scmp.ne.s32.totalorder %s5792_s23, %s7269_s27  ;;  %p7277_p11 = scmp.lt.s32.totalorder %s7269_s27, %s7269_s27 }
 0x43e   : > { %p7271_p8 = pnand %p7270_p7, %p6864_p6  ;;  %p7278_p12 = por %p7277_p11, %p7276_p10 }
 0x440   : > { %p7272_p9 = pneg %p7271_p8 }
 0x442   : > { %p7279_p13 = pnand %p7278_p12, %p7272_p9 }
 0x444   : > { %7282 = shalt.err (!%p7279_p13)
}
 0x445   : > { %s7283_s30 = scalar_lea.hbm %s8274_s7, 32 }
 0x446   : > { %p7284_p0 = scmp.ne.s32.totalorder %s8274_s7, %s7283_s30  ;;  %p7289_p3 = scmp.lt.u32.totalorder %s7283_s30, %s8274_s7 }
 0x448   : > { %p7285_p1 = pnand %p7284_p0, %p6864_p6 }
 0x44a   : > { %p7286_p2 = pneg %p7285_p1 }
 0x44c   : > { %p7291_p4 = pnand %p7289_p3, %p7286_p2 }
 0x44e   : > { %7294 = shalt.err (!%p7291_p4)
}
 0x44f   : > { %6861 = dma.vmem_to_hbm [thread:$0]  (%p6864_p6), %s5792_s23, 32, %s8274_s7, [#allocation5]  }
 0x450   : > { %7300 = dma.done.wait (%p6864_p6), [#allocation5], 32  }
 0x451   : > { %7302 = vsyncadd (%p6864_p6), [#allocation5], 4294967264 }
 0x452 PF: > { %s18_s24 = sadd.s32 1, %s7305_s24  }
 0x453   : > { %p15_p5 = scmp.ge.s32.totalorder %s18_s24, 4  }
 0x455   :  { %17 = sbr.rel (!%p15_p5) target bundleno = 1 (0x1), region = 85 }
 0x45c   :  { %5804 = vsyncpa [#allocation5], 1 }
 0x45d   :  { %5806 = vsyncpa [#allocation5 + $0x1], 1 }

</bundles_post_ra>
